<compile_context>
chip_gen: v5e
topology: v5e:2x2
jax: 0.10.0
libtpu: 0.0.40
codegen_flags: <defaults>
</compile_context>

<pallas_src>
import jax
import jax.numpy as jnp
from jax.experimental import pallas as pl
from jax.experimental.pallas import tpu as pltpu

# ----------------------------- config (small, synthetic) ---------------------
B = 2                # batch
S = 8                # sequence length
H = 32               # hidden size
NH = 2               # attention heads
DH = H // NH         # head dim
I = 64               # intermediate (FFN) size
L = 2                # encoder layers
VOCAB = 100
MAX_POS = 40
NUM_NER_TAGS = 5
NUM_SENT_TAGS = 3
LN_EPS = 1e-5

HEAD_PAD = 128       # head logits padded to a full lane width
SENT_ROWS = 8        # sentiment output padded to a full sublane tile


# ----------------------------- fused Pallas kernel ---------------------------
def _encoder_kernel(
    emb_ref, mask_ref, embg_ref, embb_ref,
    wq_ref, wk_ref, wv_ref, bq_ref, bk_ref, bv_ref,
    wo_ref, bo_ref, ln1g_ref, ln1b_ref,
    wi_ref, bi_ref, wf_ref, bf_ref, ln2g_ref, ln2b_ref,
    poolw_ref, poolb_ref, nerw_ref, nerb_ref, sentw_ref, sentb_ref,
    ner_out_ref, sent_out_ref,
    h_ref,                                   # VMEM scratch (S, H) f32, carried over l
):
    f32 = jnp.float32
    bf16 = jnp.bfloat16
    l = pl.program_id(1)

    def layer_norm(x, g, b):
        mu = jnp.mean(x, axis=-1, keepdims=True)
        xc = x - mu
        var = jnp.mean(xc * xc, axis=-1, keepdims=True)
        return xc * jax.lax.rsqrt(var + LN_EPS) * g + b

    # ---- l == 0: embedding LayerNorm initializes the carried hidden state ----
    @pl.when(l == 0)
    def _():
        h_ref[...] = layer_norm(emb_ref[0].astype(f32), embg_ref[...], embb_ref[...])

    h = h_ref[...]                            # (S, H) f32
    add_mask = mask_ref[...]                  # (1, 1, S) — broadcast hoisted, once per layer
    scale = DH ** -0.5

    # ---- batched multi-head self-attention (heads = dot_general batch dim) ----
    h3 = jnp.broadcast_to(h.astype(bf16)[None, :, :], (NH, S, H))      # (NH, S, H)
    dn_proj = (((2,), (1,)), ((0,), (0,)))                             # contract H, batch NH
    q = jax.lax.dot_general(h3, wq_ref[0], dn_proj, preferred_element_type=f32) + bq_ref[0]
    k = jax.lax.dot_general(h3, wk_ref[0], dn_proj, preferred_element_type=f32) + bk_ref[0]
    v = jax.lax.dot_general(h3, wv_ref[0], dn_proj, preferred_element_type=f32) + bv_ref[0]

    # scores: contraction dim (DH) is the trailing/lane dim of BOTH operands -> no K transpose
    dn_score = (((2,), (2,)), ((0,), (0,)))
    s = jax.lax.dot_general(q.astype(bf16), k.astype(bf16), dn_score,
                            preferred_element_type=f32) * scale + add_mask   # (NH, S, S)
    s = s - jnp.max(s, axis=-1, keepdims=True)
    p = jnp.exp(s)
    p = p * pl.reciprocal(jnp.sum(p, axis=-1, keepdims=True), approx=True)

    dn_ctx = (((2,), (1,)), ((0,), (0,)))                              # contract keys
    ctx = jax.lax.dot_general(p.astype(bf16), v.astype(bf16), dn_ctx,
                              preferred_element_type=f32)              # (NH, S, DH)

    dn_out = (((2,), (1,)), ((0,), (0,)))                              # contract DH, batch NH
    attn = jax.lax.dot_general(ctx.astype(bf16), wo_ref[0], dn_out,
                               preferred_element_type=f32)             # (NH, S, H)
    attn_out = jnp.sum(attn, axis=0) + bo_ref[0]                       # (S, H)

    h = layer_norm(attn_out + h, ln1g_ref[0], ln1b_ref[0])

    # ---- feed-forward (gelu) + residual + LayerNorm ----
    inter = jnp.dot(h.astype(bf16), wi_ref[0], preferred_element_type=f32) + bi_ref[0]
    # TODO(synk): HF XLM-R uses exact (erf) GELU; tanh approximation kept here.
    inter = jax.nn.gelu(inter, approximate=True)
    ffn = jnp.dot(inter.astype(bf16), wf_ref[0], preferred_element_type=f32) + bf_ref[0]
    h = layer_norm(ffn + h, ln2g_ref[0], ln2b_ref[0])
    h_ref[...] = h

    # ---- l == L-1: NER head (all tokens) + pooler + sentiment head ----
    @pl.when(l == L - 1)
    def _():
        hb = h.astype(bf16)
        ner = jnp.dot(hb, nerw_ref[...], preferred_element_type=f32) + nerb_ref[...]
        ner_out_ref[0] = ner.astype(ner_out_ref.dtype)                 # (S, 128)

        cls = h[0:1, :]                                                # CLS row of this batch
        pooled = jnp.tanh(jnp.dot(cls.astype(bf16), poolw_ref[...],
                                  preferred_element_type=f32) + poolb_ref[...])
        sent = jnp.dot(pooled.astype(bf16), sentw_ref[...],
                       preferred_element_type=f32) + sentb_ref[...]    # (1, 128)
        # full (8,128) sublane*lane tile -> unmasked store
        sent_out_ref[0] = jnp.broadcast_to(sent, (SENT_ROWS, HEAD_PAD)).astype(sent_out_ref.dtype)


def fused_encoder_heads(packed, emb, add_mask):
    inputs = (
        emb, add_mask,
        packed["emb_ln_g"], packed["emb_ln_b"],
        packed["wq"], packed["wk"], packed["wv"],
        packed["bq"], packed["bk"], packed["bv"],
        packed["wo"], packed["bo"],
        packed["ln1_g"], packed["ln1_b"],
        packed["wi"], packed["bi"], packed["wf"], packed["bf"],
        packed["ln2_g"], packed["ln2_b"],
        packed["pool_w"], packed["pool_b"],
        packed["ner_w"], packed["ner_b"],
        packed["sent_w"], packed["sent_b"],
    )

    def batch_spec(x):
        zeros = (0,) * (x.ndim - 1)
        return pl.BlockSpec((1,) + x.shape[1:], lambda b, l: (b,) + zeros)

    def layer_spec(x):
        zeros = (0,) * (x.ndim - 1)
        return pl.BlockSpec((1,) + x.shape[1:], lambda b, l: (l,) + zeros)

    def const_spec(x):
        zeros = (0,) * x.ndim
        return pl.BlockSpec(x.shape, lambda b, l: zeros)

    in_specs = (
        [batch_spec(emb), batch_spec(add_mask),
         const_spec(packed["emb_ln_g"]), const_spec(packed["emb_ln_b"])]
        + [layer_spec(packed[k]) for k in
           ("wq", "wk", "wv", "bq", "bk", "bv", "wo", "bo",
            "ln1_g", "ln1_b", "wi", "bi", "wf", "bf", "ln2_g", "ln2_b")]
        + [const_spec(packed[k]) for k in
           ("pool_w", "pool_b", "ner_w", "ner_b", "sent_w", "sent_b")]
    )

    return pl.pallas_call(
        _encoder_kernel,
        out_shape=(jax.ShapeDtypeStruct((B, S, HEAD_PAD), jnp.float32),
                   jax.ShapeDtypeStruct((B, SENT_ROWS, HEAD_PAD), jnp.float32)),
        grid_spec=pltpu.PrefetchScalarGridSpec(
            num_scalar_prefetch=0,
            grid=(B, L),                     # batch parallel (2 TCs on v7x), layers carried
            in_specs=in_specs,
            out_specs=(pl.BlockSpec((1, S, HEAD_PAD), lambda b, l: (b, 0, 0)),
                       pl.BlockSpec((1, SENT_ROWS, HEAD_PAD), lambda b, l: (b, 0, 0))),
            scratch_shapes=[pltpu.VMEM((S, H), jnp.float32)]),
        compiler_params=pltpu.CompilerParams(
            dimension_semantics=("parallel", "arbitrary"),
            vmem_limit_bytes=32 * 1024 * 1024),
    )(*inputs)


# ----------------------------- parameters ------------------------------------
def init_params(key):
    def nrm(k, shape, scale=0.02):
        return (scale * jax.random.normal(k, shape)).astype(jnp.float32)

    keys = iter(jax.random.split(key, 64))
    p = {
        "word_emb": nrm(next(keys), (VOCAB, H)),
        "pos_emb": nrm(next(keys), (MAX_POS, H)),
        "type_emb": nrm(next(keys), (1, H)),
        "emb_ln_g": jnp.ones((H,), jnp.float32),
        "emb_ln_b": jnp.zeros((H,), jnp.float32),
        "layers": [],
        "pool_w": nrm(next(keys), (H, H)),
        "pool_b": jnp.zeros((H,), jnp.float32),
        "ner_w": nrm(next(keys), (H, NUM_NER_TAGS)),
        "ner_b": jnp.zeros((NUM_NER_TAGS,), jnp.float32),
        "sent_w": nrm(next(keys), (H, NUM_SENT_TAGS)),
        "sent_b": jnp.zeros((NUM_SENT_TAGS,), jnp.float32),
    }
    for _ in range(L):
        lp = {
            "wq": nrm(next(keys), (H, H)), "bq": jnp.zeros((H,), jnp.float32),
            "wk": nrm(next(keys), (H, H)), "bk": jnp.zeros((H,), jnp.float32),
            "wv": nrm(next(keys), (H, H)), "bv": jnp.zeros((H,), jnp.float32),
            "wo": nrm(next(keys), (H, H)), "bo": jnp.zeros((H,), jnp.float32),
            "attn_ln_g": jnp.ones((H,), jnp.float32),
            "attn_ln_b": jnp.zeros((H,), jnp.float32),
            "wi": nrm(next(keys), (H, I)), "bi": jnp.zeros((I,), jnp.float32),
            "wf": nrm(next(keys), (I, H)), "bf": jnp.zeros((H,), jnp.float32),
            "out_ln_g": jnp.ones((H,), jnp.float32),
            "out_ln_b": jnp.zeros((H,), jnp.float32),
        }
        p["layers"].append(lp)
    return p


def pack_params(p):
    """Stack per-layer weights, split heads, cast MXU operands to bf16, pad heads."""
    bf16 = jnp.bfloat16

    def stk(name):
        return jnp.stack([lp[name] for lp in p["layers"]], axis=0)

    # per-head layouts: (L, NH, H, DH) for Q/K/V, (L, NH, DH, H) for the out-proj
    def split_cols(w):   # (L, H, H) -> (L, NH, H, DH)
        return w.reshape(L, H, NH, DH).transpose(0, 2, 1, 3).astype(bf16)

    return {
        "word_emb": p["word_emb"],
        "pos_emb": p["pos_emb"],
        "type_emb": p["type_emb"],
        "emb_ln_g": p["emb_ln_g"][None, :],
        "emb_ln_b": p["emb_ln_b"][None, :],
        "wq": split_cols(stk("wq")), "wk": split_cols(stk("wk")), "wv": split_cols(stk("wv")),
        "bq": stk("bq").reshape(L, NH, 1, DH),
        "bk": stk("bk").reshape(L, NH, 1, DH),
        "bv": stk("bv").reshape(L, NH, 1, DH),
        "wo": stk("wo").reshape(L, NH, DH, H).astype(bf16),
        "bo": stk("bo")[:, None, :],
        "ln1_g": stk("attn_ln_g")[:, None, :], "ln1_b": stk("attn_ln_b")[:, None, :],
        "wi": stk("wi").astype(bf16), "bi": stk("bi")[:, None, :],
        "wf": stk("wf").astype(bf16), "bf": stk("bf")[:, None, :],
        "ln2_g": stk("out_ln_g")[:, None, :], "ln2_b": stk("out_ln_b")[:, None, :],
        "pool_w": p["pool_w"].astype(bf16),
        "pool_b": p["pool_b"][None, :],
        "ner_w": jnp.pad(p["ner_w"], ((0, 0), (0, HEAD_PAD - NUM_NER_TAGS))).astype(bf16),
        "ner_b": jnp.pad(p["ner_b"], (0, HEAD_PAD - NUM_NER_TAGS))[None, :],
        "sent_w": jnp.pad(p["sent_w"], ((0, 0), (0, HEAD_PAD - NUM_SENT_TAGS))).astype(bf16),
        "sent_b": jnp.pad(p["sent_b"], (0, HEAD_PAD - NUM_SENT_TAGS))[None, :],
    }


# ----------------------------- model forward ---------------------------------
def _embeddings(packed, input_ids):
    # Embedding gather is glue (stays in JAX).
    # TODO(synk): XLM-R position ids use a padding_idx+1, pad-aware offset;
    # arange(S) kept for modeling simplicity.
    we = jnp.take(packed["word_emb"], input_ids, axis=0)            # (B,S,H)
    pe = packed["pos_emb"][:S][None, :, :]                          # (1,S,H)
    te = packed["type_emb"][0][None, None, :]                       # (1,1,H)
    return we + pe + te                                             # (B,S,H)


@jax.jit
def forward_both(packed, input_ids, attention_mask):
    """Run the encoder ONCE and return (ner_logits, sentiment_logits)."""
    emb = _embeddings(packed, input_ids)
    # Additive attention mask: 0 for real tokens, -1e9 for padding.  (B,1,S)
    add_mask = ((1.0 - attention_mask.astype(jnp.float32)) * -1e9)[:, None, :]
    ner_pad, sent_pad = fused_encoder_heads(packed, emb, add_mask)
    ner_logits = ner_pad[:, :, :NUM_NER_TAGS]                       # (B,S,5)
    sent_logits = sent_pad[:, 0, :NUM_SENT_TAGS]                    # (B,3)
    return ner_logits, sent_logits


def multitask_forward(packed, input_ids, attention_mask, task_name):
    """Task-dispatch wrapper matching MultitaskModel.forward semantics."""
    ner_logits, sent_logits = forward_both(packed, input_ids, attention_mask)
    if task_name == "ner":
        return ner_logits
    elif task_name == "sentiment":
        return sent_logits
    raise ValueError(f"unknown task {task_name}")


# ----------------------------- main -------------------------------------------
if __name__ == "__main__":
    key = jax.random.PRNGKey(0)
    pkey, ikey = jax.random.split(key)
    params = init_params(pkey)
    packed = pack_params(params)

    input_ids = jax.random.randint(ikey, (B, S), 0, VOCAB, dtype=jnp.int32)
    attention_mask = jnp.ones((B, S), dtype=jnp.int32).at[:, -2:].set(0)

    # Encoder runs once; both task heads share the same fused kernel call.
    ner_logits, sent_logits = forward_both(packed, input_ids, attention_mask)
    jax.block_until_ready((ner_logits, sent_logits))

    assert ner_logits.shape == (B, S, NUM_NER_TAGS)
    assert sent_logits.shape == (B, NUM_SENT_TAGS)
    assert jnp.all(jnp.isfinite(ner_logits)) and jnp.all(jnp.isfinite(sent_logits))
    print("KERNEL_OK")
</pallas_src>

<mosaic_0001>
module attributes {stable_mosaic.version = 11 : i64} {
  func.func @_encoder_kernel(%arg0: i32, %arg1: i32, %arg2: memref<1x8x32xf32, #tpu.memory_space<vmem>>, %arg3: memref<1x1x8xf32, #tpu.memory_space<vmem>>, %arg4: memref<1x32xf32, #tpu.memory_space<vmem>>, %arg5: memref<1x32xf32, #tpu.memory_space<vmem>>, %arg6: memref<1x2x32x16xbf16, #tpu.memory_space<vmem>>, %arg7: memref<1x2x32x16xbf16, #tpu.memory_space<vmem>>, %arg8: memref<1x2x32x16xbf16, #tpu.memory_space<vmem>>, %arg9: memref<1x2x1x16xf32, #tpu.memory_space<vmem>>, %arg10: memref<1x2x1x16xf32, #tpu.memory_space<vmem>>, %arg11: memref<1x2x1x16xf32, #tpu.memory_space<vmem>>, %arg12: memref<1x2x16x32xbf16, #tpu.memory_space<vmem>>, %arg13: memref<1x1x32xf32, #tpu.memory_space<vmem>>, %arg14: memref<1x1x32xf32, #tpu.memory_space<vmem>>, %arg15: memref<1x1x32xf32, #tpu.memory_space<vmem>>, %arg16: memref<1x32x64xbf16, #tpu.memory_space<vmem>>, %arg17: memref<1x1x64xf32, #tpu.memory_space<vmem>>, %arg18: memref<1x64x32xbf16, #tpu.memory_space<vmem>>, %arg19: memref<1x1x32xf32, #tpu.memory_space<vmem>>, %arg20: memref<1x1x32xf32, #tpu.memory_space<vmem>>, %arg21: memref<1x1x32xf32, #tpu.memory_space<vmem>>, %arg22: memref<32x32xbf16, #tpu.memory_space<vmem>>, %arg23: memref<1x32xf32, #tpu.memory_space<vmem>>, %arg24: memref<32x128xbf16, #tpu.memory_space<vmem>>, %arg25: memref<1x128xf32, #tpu.memory_space<vmem>>, %arg26: memref<32x128xbf16, #tpu.memory_space<vmem>>, %arg27: memref<1x128xf32, #tpu.memory_space<vmem>>, %arg28: memref<1x8x128xf32, #tpu.memory_space<vmem>>, %arg29: memref<1x8x128xf32, #tpu.memory_space<vmem>>, %arg30: memref<8x32xf32, #tpu.memory_space<vmem>>) attributes {dimension_semantics = [#tpu.dimension_semantics<parallel>, #tpu.dimension_semantics<arbitrary>], iteration_bounds = array<i64: 2, 2>, scalar_prefetch = 0 : i64, scratch_operands = 1 : i64, tpu.core_type = #tpu.core_type<tc>, window_params = [{transform_indices = @transform_0, window_bounds = array<i64: 1, 8, 32>}, {transform_indices = @transform_1, window_bounds = array<i64: 1, 1, 8>}, {pipeline_mode = #tpu.pipeline_mode<synchronous>, transform_indices = @transform_2, window_bounds = array<i64: 1, 32>}, {pipeline_mode = #tpu.pipeline_mode<synchronous>, transform_indices = @transform_3, window_bounds = array<i64: 1, 32>}, {transform_indices = @transform_4, window_bounds = array<i64: 1, 2, 32, 16>}, {transform_indices = @transform_5, window_bounds = array<i64: 1, 2, 32, 16>}, {transform_indices = @transform_6, window_bounds = array<i64: 1, 2, 32, 16>}, {transform_indices = @transform_7, window_bounds = array<i64: 1, 2, 1, 16>}, {transform_indices = @transform_8, window_bounds = array<i64: 1, 2, 1, 16>}, {transform_indices = @transform_9, window_bounds = array<i64: 1, 2, 1, 16>}, {transform_indices = @transform_10, window_bounds = array<i64: 1, 2, 16, 32>}, {transform_indices = @transform_11, window_bounds = array<i64: 1, 1, 32>}, {transform_indices = @transform_12, window_bounds = array<i64: 1, 1, 32>}, {transform_indices = @transform_13, window_bounds = array<i64: 1, 1, 32>}, {transform_indices = @transform_14, window_bounds = array<i64: 1, 32, 64>}, {transform_indices = @transform_15, window_bounds = array<i64: 1, 1, 64>}, {transform_indices = @transform_16, window_bounds = array<i64: 1, 64, 32>}, {transform_indices = @transform_17, window_bounds = array<i64: 1, 1, 32>}, {transform_indices = @transform_18, window_bounds = array<i64: 1, 1, 32>}, {transform_indices = @transform_19, window_bounds = array<i64: 1, 1, 32>}, {pipeline_mode = #tpu.pipeline_mode<synchronous>, transform_indices = @transform_20, window_bounds = array<i64: 32, 32>}, {pipeline_mode = #tpu.pipeline_mode<synchronous>, transform_indices = @transform_21, window_bounds = array<i64: 1, 32>}, {pipeline_mode = #tpu.pipeline_mode<synchronous>, transform_indices = @transform_22, window_bounds = array<i64: 32, 128>}, {pipeline_mode = #tpu.pipeline_mode<synchronous>, transform_indices = @transform_23, window_bounds = array<i64: 1, 128>}, {pipeline_mode = #tpu.pipeline_mode<synchronous>, transform_indices = @transform_24, window_bounds = array<i64: 32, 128>}, {pipeline_mode = #tpu.pipeline_mode<synchronous>, transform_indices = @transform_25, window_bounds = array<i64: 1, 128>}, {transform_indices = @transform_26, window_bounds = array<i64: 1, 8, 128>}, {transform_indices = @transform_27, window_bounds = array<i64: 1, 8, 128>}]} {
    %c0_i32 = arith.constant 0 : i32
    %0 = arith.cmpi eq, %arg1, %c0_i32 : i32
    %1 = arith.extui %0 : i1 to i32
    %c0_i32_0 = arith.constant 0 : i32
    %2 = arith.cmpi ne, %1, %c0_i32_0 : i32
    scf.if %2 {
      %c0_88 = arith.constant 0 : index
      %c0_89 = arith.constant 0 : index
      %c0_90 = arith.constant 0 : index
      %142 = vector.load %arg2[%c0_88, %c0_89, %c0_90] : memref<1x8x32xf32, #tpu.memory_space<vmem>>, vector<1x8x32xf32>
      %143 = vector.shape_cast %142 : vector<1x8x32xf32> to vector<8x32xf32>
      %c0_91 = arith.constant 0 : index
      %c0_92 = arith.constant 0 : index
      %144 = vector.load %arg4[%c0_91, %c0_92] : memref<1x32xf32, #tpu.memory_space<vmem>>, vector<1x32xf32>
      %c0_93 = arith.constant 0 : index
      %c0_94 = arith.constant 0 : index
      %145 = vector.load %arg5[%c0_93, %c0_94] : memref<1x32xf32, #tpu.memory_space<vmem>>, vector<1x32xf32>
      %cst_95 = arith.constant dense<0.000000e+00> : vector<8xf32>
      %146 = vector.multi_reduction <add>, %143, %cst_95 [1] : vector<8x32xf32> to vector<8xf32>
      %147 = vector.shape_cast %146 : vector<8xf32> to vector<8x1xf32>
      %cst_96 = arith.constant 3.200000e+01 : f32
      %148 = vector.broadcast %cst_96 : f32 to vector<8x1xf32>
      %149 = arith.divf %147, %148 : vector<8x1xf32>
      %150 = vector.broadcast %149 : vector<8x1xf32> to vector<8x32xf32>
      %151 = arith.subf %143, %150 : vector<8x32xf32>
      %152 = arith.mulf %151, %151 : vector<8x32xf32>
      %cst_97 = arith.constant dense<0.000000e+00> : vector<8xf32>
      %153 = vector.multi_reduction <add>, %152, %cst_97 [1] : vector<8x32xf32> to vector<8xf32>
      %154 = vector.shape_cast %153 : vector<8xf32> to vector<8x1xf32>
      %cst_98 = arith.constant 3.200000e+01 : f32
      %155 = vector.broadcast %cst_98 : f32 to vector<8x1xf32>
      %156 = arith.divf %154, %155 : vector<8x1xf32>
      %cst_99 = arith.constant 9.99999974E-6 : f32
      %157 = vector.broadcast %cst_99 : f32 to vector<8x1xf32>
      %158 = arith.addf %156, %157 : vector<8x1xf32>
      %159 = math.rsqrt %158 : vector<8x1xf32>
      %160 = vector.broadcast %159 : vector<8x1xf32> to vector<8x32xf32>
      %161 = arith.mulf %151, %160 : vector<8x32xf32>
      %162 = vector.broadcast %144 : vector<1x32xf32> to vector<8x32xf32>
      %163 = arith.mulf %161, %162 : vector<8x32xf32>
      %164 = vector.broadcast %145 : vector<1x32xf32> to vector<8x32xf32>
      %165 = arith.addf %163, %164 : vector<8x32xf32>
      %c0_100 = arith.constant 0 : index
      %c0_101 = arith.constant 0 : index
      %166 = vector.load %arg30[%c0_100, %c0_101] : memref<8x32xf32, #tpu.memory_space<vmem>>, vector<8x32xf32>
      tpu.vector_store %arg30[%c0_100, %c0_101], %165 {strides = array<i32>} : memref<8x32xf32, #tpu.memory_space<vmem>>, vector<8x32xf32>,
    } else {
    }
    %c0 = arith.constant 0 : index
    %c0_1 = arith.constant 0 : index
    %3 = vector.load %arg30[%c0, %c0_1] : memref<8x32xf32, #tpu.memory_space<vmem>>, vector<8x32xf32>
    %c0_2 = arith.constant 0 : index
    %c0_3 = arith.constant 0 : index
    %c0_4 = arith.constant 0 : index
    %4 = vector.load %arg3[%c0_2, %c0_3, %c0_4] : memref<1x1x8xf32, #tpu.memory_space<vmem>>, vector<1x1x8xf32>
    %5 = arith.truncf %3 : vector<8x32xf32> to vector<8x32xbf16>
    %6 = vector.shape_cast %5 : vector<8x32xbf16> to vector<1x8x32xbf16>
    %7 = vector.shape_cast %6 : vector<1x8x32xbf16> to vector<1x8x32xbf16>
    %8 = vector.broadcast %7 : vector<1x8x32xbf16> to vector<2x8x32xbf16>
    %c0_5 = arith.constant 0 : index
    %c0_6 = arith.constant 0 : index
    %c0_7 = arith.constant 0 : index
    %c0_8 = arith.constant 0 : index
    %9 = vector.load %arg6[%c0_5, %c0_6, %c0_7, %c0_8] : memref<1x2x32x16xbf16, #tpu.memory_space<vmem>>, vector<1x2x32x16xbf16>
    %10 = vector.shape_cast %9 : vector<1x2x32x16xbf16> to vector<2x32x16xbf16>
    %cst = arith.constant dense<0.000000e+00> : vector<2x8x16xf32>
    %11 = tpu.matmul %8, %10, %cst {dimension_numbers = #tpu.dot_dimension_numbers<[2], [1], [1], [2], [0, 0, 0, 1, 1, 2], [0], [0]>} : vector<2x8x32xbf16>, vector<2x32x16xbf16>, vector<2x8x16xf32> -> vector<2x8x16xf32>
    %c0_9 = arith.constant 0 : index
    %c0_10 = arith.constant 0 : index
    %c0_11 = arith.constant 0 : index
    %c0_12 = arith.constant 0 : index
    %12 = vector.load %arg9[%c0_9, %c0_10, %c0_11, %c0_12] : memref<1x2x1x16xf32, #tpu.memory_space<vmem>>, vector<1x2x1x16xf32>
    %13 = vector.shape_cast %12 : vector<1x2x1x16xf32> to vector<2x1x16xf32>
    %14 = vector.broadcast %13 : vector<2x1x16xf32> to vector<2x8x16xf32>
    %15 = arith.addf %11, %14 : vector<2x8x16xf32>
    %c0_13 = arith.constant 0 : index
    %c0_14 = arith.constant 0 : index
    %c0_15 = arith.constant 0 : index
    %c0_16 = arith.constant 0 : index
    %16 = vector.load %arg7[%c0_13, %c0_14, %c0_15, %c0_16] : memref<1x2x32x16xbf16, #tpu.memory_space<vmem>>, vector<1x2x32x16xbf16>
    %17 = vector.shape_cast %16 : vector<1x2x32x16xbf16> to vector<2x32x16xbf16>
    %cst_17 = arith.constant dense<0.000000e+00> : vector<2x8x16xf32>
    %18 = tpu.matmul %8, %17, %cst_17 {dimension_numbers = #tpu.dot_dimension_numbers<[2], [1], [1], [2], [0, 0, 0, 1, 1, 2], [0], [0]>} : vector<2x8x32xbf16>, vector<2x32x16xbf16>, vector<2x8x16xf32> -> vector<2x8x16xf32>
    %c0_18 = arith.constant 0 : index
    %c0_19 = arith.constant 0 : index
    %c0_20 = arith.constant 0 : index
    %c0_21 = arith.constant 0 : index
    %19 = vector.load %arg10[%c0_18, %c0_19, %c0_20, %c0_21] : memref<1x2x1x16xf32, #tpu.memory_space<vmem>>, vector<1x2x1x16xf32>
    %20 = vector.shape_cast %19 : vector<1x2x1x16xf32> to vector<2x1x16xf32>
    %21 = vector.broadcast %20 : vector<2x1x16xf32> to vector<2x8x16xf32>
    %22 = arith.addf %18, %21 : vector<2x8x16xf32>
    %c0_22 = arith.constant 0 : index
    %c0_23 = arith.constant 0 : index
    %c0_24 = arith.constant 0 : index
    %c0_25 = arith.constant 0 : index
    %23 = vector.load %arg8[%c0_22, %c0_23, %c0_24, %c0_25] : memref<1x2x32x16xbf16, #tpu.memory_space<vmem>>, vector<1x2x32x16xbf16>
    %24 = vector.shape_cast %23 : vector<1x2x32x16xbf16> to vector<2x32x16xbf16>
    %cst_26 = arith.constant dense<0.000000e+00> : vector<2x8x16xf32>
    %25 = tpu.matmul %8, %24, %cst_26 {dimension_numbers = #tpu.dot_dimension_numbers<[2], [1], [1], [2], [0, 0, 0, 1, 1, 2], [0], [0]>} : vector<2x8x32xbf16>, vector<2x32x16xbf16>, vector<2x8x16xf32> -> vector<2x8x16xf32>
    %c0_27 = arith.constant 0 : index
    %c0_28 = arith.constant 0 : index
    %c0_29 = arith.constant 0 : index
    %c0_30 = arith.constant 0 : index
    %26 = vector.load %arg11[%c0_27, %c0_28, %c0_29, %c0_30] : memref<1x2x1x16xf32, #tpu.memory_space<vmem>>, vector<1x2x1x16xf32>
    %27 = vector.shape_cast %26 : vector<1x2x1x16xf32> to vector<2x1x16xf32>
    %28 = vector.broadcast %27 : vector<2x1x16xf32> to vector<2x8x16xf32>
    %29 = arith.addf %25, %28 : vector<2x8x16xf32>
    %30 = arith.truncf %15 : vector<2x8x16xf32> to vector<2x8x16xbf16>
    %31 = arith.truncf %22 : vector<2x8x16xf32> to vector<2x8x16xbf16>
    %cst_31 = arith.constant dense<0.000000e+00> : vector<2x8x8xf32>
    %32 = tpu.matmul %30, %31, %cst_31 {dimension_numbers = #tpu.dot_dimension_numbers<[2], [2], [1], [1], [0, 0, 0, 1, 1, 1], [0], [0]>} : vector<2x8x16xbf16>, vector<2x8x16xbf16>, vector<2x8x8xf32> -> vector<2x8x8xf32>
    %cst_32 = arith.constant 2.500000e-01 : f32
    %33 = vector.broadcast %cst_32 : f32 to vector<2x8x8xf32>
    %34 = arith.mulf %32, %33 : vector<2x8x8xf32>
    %35 = vector.broadcast %4 : vector<1x1x8xf32> to vector<2x8x8xf32>
    %36 = arith.addf %34, %35 : vector<2x8x8xf32>
    %cst_33 = arith.constant dense<0xFF800000> : vector<2x8xf32>
    %37 = vector.multi_reduction <maximumf>, %36, %cst_33 [2] : vector<2x8x8xf32> to vector<2x8xf32>
    %38 = vector.shape_cast %37 : vector<2x8xf32> to vector<2x8x1xf32>
    %39 = vector.broadcast %38 : vector<2x8x1xf32> to vector<2x8x8xf32>
    %40 = arith.subf %36, %39 : vector<2x8x8xf32>
    %41 = math.exp %40 : vector<2x8x8xf32>
    %cst_34 = arith.constant dense<0.000000e+00> : vector<2x8xf32>
    %42 = vector.multi_reduction <add>, %41, %cst_34 [2] : vector<2x8x8xf32> to vector<2x8xf32>
    %43 = vector.shape_cast %42 : vector<2x8xf32> to vector<2x8x1xf32>
    %44 = tpu.reciprocal %43 {approx = true} : vector<2x8x1xf32> -> vector<2x8x1xf32>
    %45 = vector.broadcast %44 : vector<2x8x1xf32> to vector<2x8x8xf32>
    %46 = arith.mulf %41, %45 : vector<2x8x8xf32>
    %47 = arith.truncf %46 : vector<2x8x8xf32> to vector<2x8x8xbf16>
    %48 = arith.truncf %29 : vector<2x8x16xf32> to vector<2x8x16xbf16>
    %cst_35 = arith.constant dense<0.000000e+00> : vector<2x8x16xf32>
    %49 = tpu.matmul %47, %48, %cst_35 {dimension_numbers = #tpu.dot_dimension_numbers<[2], [1], [1], [2], [0, 0, 0, 1, 1, 2], [0], [0]>} : vector<2x8x8xbf16>, vector<2x8x16xbf16>, vector<2x8x16xf32> -> vector<2x8x16xf32>
    %50 = arith.truncf %49 : vector<2x8x16xf32> to vector<2x8x16xbf16>
    %c0_36 = arith.constant 0 : index
    %c0_37 = arith.constant 0 : index
    %c0_38 = arith.constant 0 : index
    %c0_39 = arith.constant 0 : index
    %51 = vector.load %arg12[%c0_36, %c0_37, %c0_38, %c0_39] : memref<1x2x16x32xbf16, #tpu.memory_space<vmem>>, vector<1x2x16x32xbf16>
    %52 = vector.shape_cast %51 : vector<1x2x16x32xbf16> to vector<2x16x32xbf16>
    %cst_40 = arith.constant dense<0.000000e+00> : vector<2x8x32xf32>
    %53 = tpu.matmul %50, %52, %cst_40 {dimension_numbers = #tpu.dot_dimension_numbers<[2], [1], [1], [2], [0, 0, 0, 1, 1, 2], [0], [0]>} : vector<2x8x16xbf16>, vector<2x16x32xbf16>, vector<2x8x32xf32> -> vector<2x8x32xf32>
    %cst_41 = arith.constant dense<0.000000e+00> : vector<8x32xf32>
    %54 = vector.multi_reduction <add>, %53, %cst_41 [0] : vector<2x8x32xf32> to vector<8x32xf32>
    %c0_42 = arith.constant 0 : index
    %c0_43 = arith.constant 0 : index
    %c0_44 = arith.constant 0 : index
    %55 = vector.load %arg13[%c0_42, %c0_43, %c0_44] : memref<1x1x32xf32, #tpu.memory_space<vmem>>, vector<1x1x32xf32>
    %56 = vector.shape_cast %55 : vector<1x1x32xf32> to vector<1x32xf32>
    %57 = vector.broadcast %56 : vector<1x32xf32> to vector<8x32xf32>
    %58 = arith.addf %54, %57 : vector<8x32xf32>
    %59 = arith.addf %58, %3 : vector<8x32xf32>
    %c0_45 = arith.constant 0 : index
    %c0_46 = arith.constant 0 : index
    %c0_47 = arith.constant 0 : index
    %60 = vector.load %arg14[%c0_45, %c0_46, %c0_47] : memref<1x1x32xf32, #tpu.memory_space<vmem>>, vector<1x1x32xf32>
    %61 = vector.shape_cast %60 : vector<1x1x32xf32> to vector<1x32xf32>
    %c0_48 = arith.constant 0 : index
    %c0_49 = arith.constant 0 : index
    %c0_50 = arith.constant 0 : index
    %62 = vector.load %arg15[%c0_48, %c0_49, %c0_50] : memref<1x1x32xf32, #tpu.memory_space<vmem>>, vector<1x1x32xf32>
    %63 = vector.shape_cast %62 : vector<1x1x32xf32> to vector<1x32xf32>
    %cst_51 = arith.constant dense<0.000000e+00> : vector<8xf32>
    %64 = vector.multi_reduction <add>, %59, %cst_51 [1] : vector<8x32xf32> to vector<8xf32>
    %65 = vector.shape_cast %64 : vector<8xf32> to vector<8x1xf32>
    %cst_52 = arith.constant 3.200000e+01 : f32
    %66 = vector.broadcast %cst_52 : f32 to vector<8x1xf32>
    %67 = arith.divf %65, %66 : vector<8x1xf32>
    %68 = vector.broadcast %67 : vector<8x1xf32> to vector<8x32xf32>
    %69 = arith.subf %59, %68 : vector<8x32xf32>
    %70 = arith.mulf %69, %69 : vector<8x32xf32>
    %cst_53 = arith.constant dense<0.000000e+00> : vector<8xf32>
    %71 = vector.multi_reduction <add>, %70, %cst_53 [1] : vector<8x32xf32> to vector<8xf32>
    %72 = vector.shape_cast %71 : vector<8xf32> to vector<8x1xf32>
    %cst_54 = arith.constant 3.200000e+01 : f32
    %73 = vector.broadcast %cst_54 : f32 to vector<8x1xf32>
    %74 = arith.divf %72, %73 : vector<8x1xf32>
    %cst_55 = arith.constant 9.99999974E-6 : f32
    %75 = vector.broadcast %cst_55 : f32 to vector<8x1xf32>
    %76 = arith.addf %74, %75 : vector<8x1xf32>
    %77 = math.rsqrt %76 : vector<8x1xf32>
    %78 = vector.broadcast %77 : vector<8x1xf32> to vector<8x32xf32>
    %79 = arith.mulf %69, %78 : vector<8x32xf32>
    %80 = vector.broadcast %61 : vector<1x32xf32> to vector<8x32xf32>
    %81 = arith.mulf %79, %80 : vector<8x32xf32>
    %82 = vector.broadcast %63 : vector<1x32xf32> to vector<8x32xf32>
    %83 = arith.addf %81, %82 : vector<8x32xf32>
    %84 = arith.truncf %83 : vector<8x32xf32> to vector<8x32xbf16>
    %c0_56 = arith.constant 0 : index
    %c0_57 = arith.constant 0 : index
    %c0_58 = arith.constant 0 : index
    %85 = vector.load %arg16[%c0_56, %c0_57, %c0_58] : memref<1x32x64xbf16, #tpu.memory_space<vmem>>, vector<1x32x64xbf16>
    %86 = vector.shape_cast %85 : vector<1x32x64xbf16> to vector<32x64xbf16>
    %cst_59 = arith.constant dense<0.000000e+00> : vector<8x64xf32>
    %87 = tpu.matmul %84, %86, %cst_59 {dimension_numbers = #tpu.dot_dimension_numbers<[1], [0], [0], [1], [0, 0, 1, 1], [], []>} : vector<8x32xbf16>, vector<32x64xbf16>, vector<8x64xf32> -> vector<8x64xf32>
    %c0_60 = arith.constant 0 : index
    %c0_61 = arith.constant 0 : index
    %c0_62 = arith.constant 0 : index
    %88 = vector.load %arg17[%c0_60, %c0_61, %c0_62] : memref<1x1x64xf32, #tpu.memory_space<vmem>>, vector<1x1x64xf32>
    %89 = vector.shape_cast %88 : vector<1x1x64xf32> to vector<1x64xf32>
    %90 = vector.broadcast %89 : vector<1x64xf32> to vector<8x64xf32>
    %91 = arith.addf %87, %90 : vector<8x64xf32>
    %92 = arith.mulf %91, %91 : vector<8x64xf32>
    %93 = arith.mulf %91, %92 : vector<8x64xf32>
    %cst_63 = arith.constant 4.471500e-02 : f32
    %94 = vector.broadcast %cst_63 : f32 to vector<8x64xf32>
    %95 = arith.mulf %94, %93 : vector<8x64xf32>
    %96 = arith.addf %91, %95 : vector<8x64xf32>
    %cst_64 = arith.constant 0.797884583 : f32
    %97 = vector.broadcast %cst_64 : f32 to vector<8x64xf32>
    %98 = arith.mulf %97, %96 : vector<8x64xf32>
    %99 = math.tanh %98 : vector<8x64xf32>
    %cst_65 = arith.constant 1.000000e+00 : f32
    %100 = vector.broadcast %cst_65 : f32 to vector<8x64xf32>
    %101 = arith.addf %100, %99 : vector<8x64xf32>
    %cst_66 = arith.constant 5.000000e-01 : f32
    %102 = vector.broadcast %cst_66 : f32 to vector<8x64xf32>
    %103 = arith.mulf %102, %101 : vector<8x64xf32>
    %104 = arith.mulf %91, %103 : vector<8x64xf32>
    %105 = arith.truncf %104 : vector<8x64xf32> to vector<8x64xbf16>
    %c0_67 = arith.constant 0 : index
    %c0_68 = arith.constant 0 : index
    %c0_69 = arith.constant 0 : index
    %106 = vector.load %arg18[%c0_67, %c0_68, %c0_69] : memref<1x64x32xbf16, #tpu.memory_space<vmem>>, vector<1x64x32xbf16>
    %107 = vector.shape_cast %106 : vector<1x64x32xbf16> to vector<64x32xbf16>
    %cst_70 = arith.constant dense<0.000000e+00> : vector<8x32xf32>
    %108 = tpu.matmul %105, %107, %cst_70 {dimension_numbers = #tpu.dot_dimension_numbers<[1], [0], [0], [1], [0, 0, 1, 1], [], []>} : vector<8x64xbf16>, vector<64x32xbf16>, vector<8x32xf32> -> vector<8x32xf32>
    %c0_71 = arith.constant 0 : index
    %c0_72 = arith.constant 0 : index
    %c0_73 = arith.constant 0 : index
    %109 = vector.load %arg19[%c0_71, %c0_72, %c0_73] : memref<1x1x32xf32, #tpu.memory_space<vmem>>, vector<1x1x32xf32>
    %110 = vector.shape_cast %109 : vector<1x1x32xf32> to vector<1x32xf32>
    %111 = vector.broadcast %110 : vector<1x32xf32> to vector<8x32xf32>
    %112 = arith.addf %108, %111 : vector<8x32xf32>
    %113 = arith.addf %112, %83 : vector<8x32xf32>
    %c0_74 = arith.constant 0 : index
    %c0_75 = arith.constant 0 : index
    %c0_76 = arith.constant 0 : index
    %114 = vector.load %arg20[%c0_74, %c0_75, %c0_76] : memref<1x1x32xf32, #tpu.memory_space<vmem>>, vector<1x1x32xf32>
    %115 = vector.shape_cast %114 : vector<1x1x32xf32> to vector<1x32xf32>
    %c0_77 = arith.constant 0 : index
    %c0_78 = arith.constant 0 : index
    %c0_79 = arith.constant 0 : index
    %116 = vector.load %arg21[%c0_77, %c0_78, %c0_79] : memref<1x1x32xf32, #tpu.memory_space<vmem>>, vector<1x1x32xf32>
    %117 = vector.shape_cast %116 : vector<1x1x32xf32> to vector<1x32xf32>
    %cst_80 = arith.constant dense<0.000000e+00> : vector<8xf32>
    %118 = vector.multi_reduction <add>, %113, %cst_80 [1] : vector<8x32xf32> to vector<8xf32>
    %119 = vector.shape_cast %118 : vector<8xf32> to vector<8x1xf32>
    %cst_81 = arith.constant 3.200000e+01 : f32
    %120 = vector.broadcast %cst_81 : f32 to vector<8x1xf32>
    %121 = arith.divf %119, %120 : vector<8x1xf32>
    %122 = vector.broadcast %121 : vector<8x1xf32> to vector<8x32xf32>
    %123 = arith.subf %113, %122 : vector<8x32xf32>
    %124 = arith.mulf %123, %123 : vector<8x32xf32>
    %cst_82 = arith.constant dense<0.000000e+00> : vector<8xf32>
    %125 = vector.multi_reduction <add>, %124, %cst_82 [1] : vector<8x32xf32> to vector<8xf32>
    %126 = vector.shape_cast %125 : vector<8xf32> to vector<8x1xf32>
    %cst_83 = arith.constant 3.200000e+01 : f32
    %127 = vector.broadcast %cst_83 : f32 to vector<8x1xf32>
    %128 = arith.divf %126, %127 : vector<8x1xf32>
    %cst_84 = arith.constant 9.99999974E-6 : f32
    %129 = vector.broadcast %cst_84 : f32 to vector<8x1xf32>
    %130 = arith.addf %128, %129 : vector<8x1xf32>
    %131 = math.rsqrt %130 : vector<8x1xf32>
    %132 = vector.broadcast %131 : vector<8x1xf32> to vector<8x32xf32>
    %133 = arith.mulf %123, %132 : vector<8x32xf32>
    %134 = vector.broadcast %115 : vector<1x32xf32> to vector<8x32xf32>
    %135 = arith.mulf %133, %134 : vector<8x32xf32>
    %136 = vector.broadcast %117 : vector<1x32xf32> to vector<8x32xf32>
    %137 = arith.addf %135, %136 : vector<8x32xf32>
    %c0_85 = arith.constant 0 : index
    %c0_86 = arith.constant 0 : index
    %138 = vector.load %arg30[%c0_85, %c0_86] : memref<8x32xf32, #tpu.memory_space<vmem>>, vector<8x32xf32>
    tpu.vector_store %arg30[%c0_85, %c0_86], %137 {strides = array<i32>} : memref<8x32xf32, #tpu.memory_space<vmem>>, vector<8x32xf32>,
    %c1_i32 = arith.constant 1 : i32
    %139 = arith.cmpi eq, %arg1, %c1_i32 : i32
    %140 = arith.extui %139 : i1 to i32
    %c0_i32_87 = arith.constant 0 : i32
    %141 = arith.cmpi ne, %140, %c0_i32_87 : i32
    scf.if %141 {
      %142 = arith.truncf %137 : vector<8x32xf32> to vector<8x32xbf16>
      %c0_88 = arith.constant 0 : index
      %c0_89 = arith.constant 0 : index
      %143 = vector.load %arg24[%c0_88, %c0_89] : memref<32x128xbf16, #tpu.memory_space<vmem>>, vector<32x128xbf16>
      %cst_90 = arith.constant dense<0.000000e+00> : vector<8x128xf32>
      %144 = tpu.matmul %142, %143, %cst_90 {dimension_numbers = #tpu.dot_dimension_numbers<[1], [0], [0], [1], [0, 0, 1, 1], [], []>} : vector<8x32xbf16>, vector<32x128xbf16>, vector<8x128xf32> -> vector<8x128xf32>
      %c0_91 = arith.constant 0 : index
      %c0_92 = arith.constant 0 : index
      %145 = vector.load %arg25[%c0_91, %c0_92] : memref<1x128xf32, #tpu.memory_space<vmem>>, vector<1x128xf32>
      %146 = vector.broadcast %145 : vector<1x128xf32> to vector<8x128xf32>
      %147 = arith.addf %144, %146 : vector<8x128xf32>
      %c0_93 = arith.constant 0 : index
      %c0_94 = arith.constant 0 : index
      %c0_95 = arith.constant 0 : index
      %148 = vector.load %arg28[%c0_93, %c0_94, %c0_95] : memref<1x8x128xf32, #tpu.memory_space<vmem>>, vector<1x8x128xf32>
      %149 = vector.shape_cast %148 : vector<1x8x128xf32> to vector<8x128xf32>
      %150 = vector.shape_cast %147 : vector<8x128xf32> to vector<1x8x128xf32>
      tpu.vector_store %arg28[%c0_93, %c0_94, %c0_95], %150 {strides = array<i32>} : memref<1x8x128xf32, #tpu.memory_space<vmem>>, vector<1x8x128xf32>,
      %151 = vector.extract_strided_slice %137 {offsets = [0, 0], sizes = [1, 32], strides = [1, 1]} : vector<8x32xf32> to vector<1x32xf32>
      %152 = arith.truncf %151 : vector<1x32xf32> to vector<1x32xbf16>
      %c0_96 = arith.constant 0 : index
      %c0_97 = arith.constant 0 : index
      %153 = vector.load %arg22[%c0_96, %c0_97] : memref<32x32xbf16, #tpu.memory_space<vmem>>, vector<32x32xbf16>
      %cst_98 = arith.constant dense<0.000000e+00> : vector<1x32xf32>
      %154 = tpu.matmul %152, %153, %cst_98 {dimension_numbers = #tpu.dot_dimension_numbers<[1], [0], [0], [1], [0, 0, 1, 1], [], []>} : vector<1x32xbf16>, vector<32x32xbf16>, vector<1x32xf32> -> vector<1x32xf32>
      %c0_99 = arith.constant 0 : index
      %c0_100 = arith.constant 0 : index
      %155 = vector.load %arg23[%c0_99, %c0_100] : memref<1x32xf32, #tpu.memory_space<vmem>>, vector<1x32xf32>
      %156 = arith.addf %154, %155 : vector<1x32xf32>
      %157 = math.tanh %156 : vector<1x32xf32>
      %158 = arith.truncf %157 : vector<1x32xf32> to vector<1x32xbf16>
      %c0_101 = arith.constant 0 : index
      %c0_102 = arith.constant 0 : index
      %159 = vector.load %arg26[%c0_101, %c0_102] : memref<32x128xbf16, #tpu.memory_space<vmem>>, vector<32x128xbf16>
      %cst_103 = arith.constant dense<0.000000e+00> : vector<1x128xf32>
      %160 = tpu.matmul %158, %159, %cst_103 {dimension_numbers = #tpu.dot_dimension_numbers<[1], [0], [0], [1], [0, 0, 1, 1], [], []>} : vector<1x32xbf16>, vector<32x128xbf16>, vector<1x128xf32> -> vector<1x128xf32>
      %c0_104 = arith.constant 0 : index
      %c0_105 = arith.constant 0 : index
      %161 = vector.load %arg27[%c0_104, %c0_105] : memref<1x128xf32, #tpu.memory_space<vmem>>, vector<1x128xf32>
      %162 = arith.addf %160, %161 : vector<1x128xf32>
      %163 = vector.shape_cast %162 : vector<1x128xf32> to vector<1x128xf32>
      %164 = vector.broadcast %163 : vector<1x128xf32> to vector<8x128xf32>
      %c0_106 = arith.constant 0 : index
      %c0_107 = arith.constant 0 : index
      %c0_108 = arith.constant 0 : index
      %165 = vector.load %arg29[%c0_106, %c0_107, %c0_108] : memref<1x8x128xf32, #tpu.memory_space<vmem>>, vector<1x8x128xf32>
      %166 = vector.shape_cast %165 : vector<1x8x128xf32> to vector<8x128xf32>
      %167 = vector.shape_cast %164 : vector<8x128xf32> to vector<1x8x128xf32>
      tpu.vector_store %arg29[%c0_106, %c0_107, %c0_108], %167 {strides = array<i32>} : memref<1x8x128xf32, #tpu.memory_space<vmem>>, vector<1x8x128xf32>,
    } else {
    }
    return
  }
  func.func @transform_0(%arg0: i32, %arg1: i32) -> (i32, i32, i32) {
    %c0_i32 = arith.constant 0 : i32
    %c0_i32_0 = arith.constant 0 : i32
    %c0_i32_1 = arith.constant 0 : i32
    return %arg0, %c0_i32, %c0_i32_0 : i32, i32, i32
  }
  func.func @transform_1(%arg0: i32, %arg1: i32) -> (i32, i32, i32) {
    %c0_i32 = arith.constant 0 : i32
    %c0_i32_0 = arith.constant 0 : i32
    %c0_i32_1 = arith.constant 0 : i32
    return %arg0, %c0_i32, %c0_i32_0 : i32, i32, i32
  }
  func.func @transform_2(%arg0: i32, %arg1: i32) -> (i32, i32) {
    %c0_i32 = arith.constant 0 : i32
    %c0_i32_0 = arith.constant 0 : i32
    %c0_i32_1 = arith.constant 0 : i32
    return %c0_i32, %c0_i32_0 : i32, i32
  }
  func.func @transform_3(%arg0: i32, %arg1: i32) -> (i32, i32) {
    %c0_i32 = arith.constant 0 : i32
    %c0_i32_0 = arith.constant 0 : i32
    %c0_i32_1 = arith.constant 0 : i32
    return %c0_i32, %c0_i32_0 : i32, i32
  }
  func.func @transform_4(%arg0: i32, %arg1: i32) -> (i32, i32, i32, i32) {
    %c0_i32 = arith.constant 0 : i32
    %c0_i32_0 = arith.constant 0 : i32
    %c0_i32_1 = arith.constant 0 : i32
    %c0_i32_2 = arith.constant 0 : i32
    return %arg1, %c0_i32, %c0_i32_0, %c0_i32_1 : i32, i32, i32, i32
  }
  func.func @transform_5(%arg0: i32, %arg1: i32) -> (i32, i32, i32, i32) {
    %c0_i32 = arith.constant 0 : i32
    %c0_i32_0 = arith.constant 0 : i32
    %c0_i32_1 = arith.constant 0 : i32
    %c0_i32_2 = arith.constant 0 : i32
    return %arg1, %c0_i32, %c0_i32_0, %c0_i32_1 : i32, i32, i32, i32
  }
  func.func @transform_6(%arg0: i32, %arg1: i32) -> (i32, i32, i32, i32) {
    %c0_i32 = arith.constant 0 : i32
    %c0_i32_0 = arith.constant 0 : i32
    %c0_i32_1 = arith.constant 0 : i32
    %c0_i32_2 = arith.constant 0 : i32
    return %arg1, %c0_i32, %c0_i32_0, %c0_i32_1 : i32, i32, i32, i32
  }
  func.func @transform_7(%arg0: i32, %arg1: i32) -> (i32, i32, i32, i32) {
    %c0_i32 = arith.constant 0 : i32
    %c0_i32_0 = arith.constant 0 : i32
    %c0_i32_1 = arith.constant 0 : i32
    %c0_i32_2 = arith.constant 0 : i32
    return %arg1, %c0_i32, %c0_i32_0, %c0_i32_1 : i32, i32, i32, i32
  }
  func.func @transform_8(%arg0: i32, %arg1: i32) -> (i32, i32, i32, i32) {
    %c0_i32 = arith.constant 0 : i32
    %c0_i32_0 = arith.constant 0 : i32
    %c0_i32_1 = arith.constant 0 : i32
    %c0_i32_2 = arith.constant 0 : i32
    return %arg1, %c0_i32, %c0_i32_0, %c0_i32_1 : i32, i32, i32, i32
  }
  func.func @transform_9(%arg0: i32, %arg1: i32) -> (i32, i32, i32, i32) {
    %c0_i32 = arith.constant 0 : i32
    %c0_i32_0 = arith.constant 0 : i32
    %c0_i32_1 = arith.constant 0 : i32
    %c0_i32_2 = arith.constant 0 : i32
    return %arg1, %c0_i32, %c0_i32_0, %c0_i32_1 : i32, i32, i32, i32
  }
  func.func @transform_10(%arg0: i32, %arg1: i32) -> (i32, i32, i32, i32) {
    %c0_i32 = arith.constant 0 : i32
    %c0_i32_0 = arith.constant 0 : i32
    %c0_i32_1 = arith.constant 0 : i32
    %c0_i32_2 = arith.constant 0 : i32
    return %arg1, %c0_i32, %c0_i32_0, %c0_i32_1 : i32, i32, i32, i32
  }
  func.func @transform_11(%arg0: i32, %arg1: i32) -> (i32, i32, i32) {
    %c0_i32 = arith.constant 0 : i32
    %c0_i32_0 = arith.constant 0 : i32
    %c0_i32_1 = arith.constant 0 : i32
    return %arg1, %c0_i32, %c0_i32_0 : i32, i32, i32
  }
  func.func @transform_12(%arg0: i32, %arg1: i32) -> (i32, i32, i32) {
    %c0_i32 = arith.constant 0 : i32
    %c0_i32_0 = arith.constant 0 : i32
    %c0_i32_1 = arith.constant 0 : i32
    return %arg1, %c0_i32, %c0_i32_0 : i32, i32, i32
  }
  func.func @transform_13(%arg0: i32, %arg1: i32) -> (i32, i32, i32) {
    %c0_i32 = arith.constant 0 : i32
    %c0_i32_0 = arith.constant 0 : i32
    %c0_i32_1 = arith.constant 0 : i32
    return %arg1, %c0_i32, %c0_i32_0 : i32, i32, i32
  }
  func.func @transform_14(%arg0: i32, %arg1: i32) -> (i32, i32, i32) {
    %c0_i32 = arith.constant 0 : i32
    %c0_i32_0 = arith.constant 0 : i32
    %c0_i32_1 = arith.constant 0 : i32
    return %arg1, %c0_i32, %c0_i32_0 : i32, i32, i32
  }
  func.func @transform_15(%arg0: i32, %arg1: i32) -> (i32, i32, i32) {
    %c0_i32 = arith.constant 0 : i32
    %c0_i32_0 = arith.constant 0 : i32
    %c0_i32_1 = arith.constant 0 : i32
    return %arg1, %c0_i32, %c0_i32_0 : i32, i32, i32
  }
  func.func @transform_16(%arg0: i32, %arg1: i32) -> (i32, i32, i32) {
    %c0_i32 = arith.constant 0 : i32
    %c0_i32_0 = arith.constant 0 : i32
    %c0_i32_1 = arith.constant 0 : i32
    return %arg1, %c0_i32, %c0_i32_0 : i32, i32, i32
  }
  func.func @transform_17(%arg0: i32, %arg1: i32) -> (i32, i32, i32) {
    %c0_i32 = arith.constant 0 : i32
    %c0_i32_0 = arith.constant 0 : i32
    %c0_i32_1 = arith.constant 0 : i32
    return %arg1, %c0_i32, %c0_i32_0 : i32, i32, i32
  }
  func.func @transform_18(%arg0: i32, %arg1: i32) -> (i32, i32, i32) {
    %c0_i32 = arith.constant 0 : i32
    %c0_i32_0 = arith.constant 0 : i32
    %c0_i32_1 = arith.constant 0 : i32
    return %arg1, %c0_i32, %c0_i32_0 : i32, i32, i32
  }
  func.func @transform_19(%arg0: i32, %arg1: i32) -> (i32, i32, i32) {
    %c0_i32 = arith.constant 0 : i32
    %c0_i32_0 = arith.constant 0 : i32
    %c0_i32_1 = arith.constant 0 : i32
    return %arg1, %c0_i32, %c0_i32_0 : i32, i32, i32
  }
  func.func @transform_20(%arg0: i32, %arg1: i32) -> (i32, i32) {
    %c0_i32 = arith.constant 0 : i32
    %c0_i32_0 = arith.constant 0 : i32
    %c0_i32_1 = arith.constant 0 : i32
    return %c0_i32, %c0_i32_0 : i32, i32
  }
  func.func @transform_21(%arg0: i32, %arg1: i32) -> (i32, i32) {
    %c0_i32 = arith.constant 0 : i32
    %c0_i32_0 = arith.constant 0 : i32
    %c0_i32_1 = arith.constant 0 : i32
    return %c0_i32, %c0_i32_0 : i32, i32
  }
  func.func @transform_22(%arg0: i32, %arg1: i32) -> (i32, i32) {
    %c0_i32 = arith.constant 0 : i32
    %c0_i32_0 = arith.constant 0 : i32
    %c0_i32_1 = arith.constant 0 : i32
    return %c0_i32, %c0_i32_0 : i32, i32
  }
  func.func @transform_23(%arg0: i32, %arg1: i32) -> (i32, i32) {
    %c0_i32 = arith.constant 0 : i32
    %c0_i32_0 = arith.constant 0 : i32
    %c0_i32_1 = arith.constant 0 : i32
    return %c0_i32, %c0_i32_0 : i32, i32
  }
  func.func @transform_24(%arg0: i32, %arg1: i32) -> (i32, i32) {
    %c0_i32 = arith.constant 0 : i32
    %c0_i32_0 = arith.constant 0 : i32
    %c0_i32_1 = arith.constant 0 : i32
    return %c0_i32, %c0_i32_0 : i32, i32
  }
  func.func @transform_25(%arg0: i32, %arg1: i32) -> (i32, i32) {
    %c0_i32 = arith.constant 0 : i32
    %c0_i32_0 = arith.constant 0 : i32
    %c0_i32_1 = arith.constant 0 : i32
    return %c0_i32, %c0_i32_0 : i32, i32
  }
  func.func @transform_26(%arg0: i32, %arg1: i32) -> (i32, i32, i32) {
    %c0_i32 = arith.constant 0 : i32
    %c0_i32_0 = arith.constant 0 : i32
    %c0_i32_1 = arith.constant 0 : i32
    return %arg0, %c0_i32, %c0_i32_0 : i32, i32, i32
  }
  func.func @transform_27(%arg0: i32, %arg1: i32) -> (i32, i32, i32) {
    %c0_i32 = arith.constant 0 : i32
    %c0_i32_0 = arith.constant 0 : i32
    %c0_i32_1 = arith.constant 0 : i32
    return %arg0, %c0_i32, %c0_i32_0 : i32, i32, i32
  }
}

</mosaic_0001>

<bundles_post_ra>
// kernel: forward_both.1
= control target key start
LH: loop header
LB: loop body
LE: loop exit
PB: predicated region body
PF: predicated region fallthrough
CT: control target
= control target key end

     0   :  { %s2553_s30 = smov 0   ;;  %s2849_s0 = inlined_call_operand.vmem [shape: f32[2,8,32], index: 0, kind: input, shape index: {}]   ;;  %s2850_s1 = inlined_call_operand.vmem [shape: f32[2,1,8], index: 1, kind: input, shape index: {}]   ;;  %s2851_s2 = inlined_call_operand.vmem [shape: f32[1,32], index: 2, kind: input, shape index: {}]   ;;  %s2852_s3 = inlined_call_operand.vmem [shape: f32[1,32], index: 3, kind: input, shape index: {}]   ;;  %s2853_s4 = inlined_call_operand.vmem [shape: bf16[2,2,32,16], index: 4, kind: input, shape index: {}]   ;;  %s2854_s5 = inlined_call_operand.vmem [shape: bf16[2,2,32,16], index: 5, kind: input, shape index: {}]   ;;  %s2855_s6 = inlined_call_operand.vmem [shape: bf16[2,2,32,16], index: 6, kind: input, shape index: {}]   ;;  %s2856_s7 = inlined_call_operand.vmem [shape: f32[2,2,1,16], index: 7, kind: input, shape index: {}]   ;;  %s2857_s8 = inlined_call_operand.vmem [shape: f32[2,2,1,16], index: 8, kind: input, shape index: {}]   ;;  %s2858_s9 = inlined_call_operand.vmem [shape: f32[2,2,1,16], index: 9, kind: input, shape index: {}]   ;;  %s2859_s10 = inlined_call_operand.vmem [shape: bf16[2,2,16,32], index: 10, kind: input, shape index: {}]   ;;  %s2860_s11 = inlined_call_operand.vmem [shape: f32[2,1,32], index: 11, kind: input, shape index: {}]   ;;  %s2861_s12 = inlined_call_operand.vmem [shape: f32[2,1,32], index: 12, kind: input, shape index: {}]   ;;  %s2862_s13 = inlined_call_operand.vmem [shape: f32[2,1,32], index: 13, kind: input, shape index: {}]   ;;  %s2863_s14 = inlined_call_operand.vmem [shape: bf16[2,32,64], index: 14, kind: input, shape index: {}]   ;;  %s2864_s15 = inlined_call_operand.vmem [shape: f32[2,1,64], index: 15, kind: input, shape index: {}]   ;;  %s2865_s16 = inlined_call_operand.vmem [shape: bf16[2,64,32], index: 16, kind: input, shape index: {}]   ;;  %s2866_s17 = inlined_call_operand.vmem [shape: f32[2,1,32], index: 17, kind: input, shape index: {}]   ;;  %s2867_s18 = inlined_call_operand.vmem [shape: f32[2,1,32], index: 18, kind: input, shape index: {}]   ;;  %s2868_s19 = inlined_call_operand.vmem [shape: f32[2,1,32], index: 19, kind: input, shape index: {}]   ;;  %s2869_s20 = inlined_call_operand.vmem [shape: bf16[32,32], index: 20, kind: input, shape index: {}]   ;;  %s2870_s21 = inlined_call_operand.vmem [shape: f32[1,32], index: 21, kind: input, shape index: {}]   ;;  %s2871_s22 = inlined_call_operand.vmem [shape: bf16[32,128], index: 22, kind: input, shape index: {}]   ;;  %s2872_s23 = inlined_call_operand.vmem [shape: f32[1,128], index: 23, kind: input, shape index: {}]   ;;  %s2873_s24 = inlined_call_operand.vmem [shape: bf16[32,128], index: 24, kind: input, shape index: {}]   ;;  %s2874_s25 = inlined_call_operand.vmem [shape: f32[1,128], index: 25, kind: input, shape index: {}]   ;;  %s2875_s26 = inlined_call_operand.vmem [shape: f32[2,8,128], index: 26, kind: output, shape index: {0}]   ;;  %s2876_s27 = inlined_call_operand.vmem [shape: f32[2,8,128], index: 27, kind: output, shape index: {1}]  }
   0x1   :  { %2890 = sst [smem:[#allocation15_spill]] %s2849_s0 }
   0x2   :  { %2891 = sst [smem:[#allocation16_spill]] %s2850_s1 }
   0x3   :  { %2892 = sst [smem:[#allocation17_spill]] %s2851_s2 }
   0x4   :  { %2893 = sst [smem:[#allocation18_spill]] %s2852_s3 }
   0x5   :  { %2894 = sst [smem:[#allocation19_spill]] %s2853_s4  ;;  %s2549_s4 = smov 0  }
   0x6   :  { %2895 = sst [smem:[#allocation20_spill]] %s2854_s5 }
   0x7   :  { %2896 = sst [smem:[#allocation21_spill]] %s2855_s6 }
   0x8   :  { %2897 = sst [smem:[#allocation22_spill]] %s2856_s7  ;;  %s2547_s7 = smov 0  }
   0x9   :  { %2898 = sst [smem:[#allocation23_spill]] %s2857_s8  ;;  %s2551_s8 = smov 0  }
   0xa   :  { %2899 = sst [smem:[#allocation24_spill]] %s2858_s9  ;;  %s2555_s9 = smov 0  }
   0xb   :  { %2900 = sst [smem:[#allocation25_spill]] %s2859_s10 }
   0xc   :  { %2901 = sst [smem:[#allocation26_spill]] %s2860_s11 }
   0xd   :  { %2902 = sst [smem:[#allocation27_spill]] %s2863_s14 }
   0xe   :  { %2903 = sst [smem:[#allocation28_spill]] %s2865_s16 }
   0xf   :  { %2904 = sst [smem:[#allocation29_spill]] %s2868_s19 }
  0x10   :  { %2905 = sst [smem:[#allocation30_spill]] %s2869_s20 }
  0x11   :  { %2906 = sst [smem:[#allocation31_spill]] %s2870_s21 }
  0x12   :  { %2907 = sst [smem:[#allocation32_spill]] %s2871_s22 }
  0x13   :  { %2908 = sst [smem:[#allocation33_spill]] %s2872_s23 }
  0x14   :  { %2909 = sst [smem:[#allocation34_spill]] %s2873_s24 }
  0x15   :  { %2910 = sst [smem:[#allocation35_spill]] %s2874_s25 }
  0x16   :  { %2911 = sst [smem:[#allocation36_spill]] %s2875_s26 }
  0x17   :  { %2912 = sst [smem:[#allocation37_spill]] %s2876_s27 }
  0x18 LB: > { %2913 = sst [smem:[#allocation3_spill]] %s2387_s7  ;;  %s47_s5 = sadd.s32 1, %s2395_s8  ;;  %s2403_s9 = sphi %s2555_s9, %s38_s9   ;;  %s2399_s30 = sphi %s2553_s30, %s2971_s30   ;;  %s2395_s8 = sphi %s2551_s8, %s2970_s8   ;;  %s2391_s4 = sphi %s2549_s4, %s2969_s4   ;;  %s2387_s7 = sphi %s2547_s7, %s2968_s7  }
  0x19   : > { %2914 = sst [smem:[#allocation4_spill]] %s2395_s8  ;;  %s50_s28 = sadd.s32 1, %s2399_s30 }
  0x1a   : > { %2915 = sst [smem:[#allocation5_spill]] %s2399_s30  ;;  %p48_p0 = scmp.ge.s32.totalorder %s47_s5, 2 }
  0x1b   : > { %2916 = sst [smem:[#allocation6_spill]] %s2403_s9  ;;  %p2108_p1 = scmp.ge.s32.totalorder %s2403_s9, 1 }
  0x1c   : > { %p902_p2 = scmp.lt.s32.totalorder %s2403_s9, 5  ;;  %s2973_s5 = smov (%p48_p0, %s47_s5), 0 }
  0x1d   : > { %2917 = sst [smem:[#allocation7_spill]] %s2973_s5  ;;  %s2975_s28 = smov (!%p48_p0, %s50_s28), %s2399_s30 }
  0x1e   : > { %p903_p3 = pnand %p2108_p1, %p902_p2  ;;  %p52_p4 = scmp.ge.s32.totalorder %s2975_s28, 2 }
  0x20   : > { %s2977_s28 = smov (%p52_p4, %s2975_s28), 0  ;;  %906 = sbr.rel (%p903_p3) target bundleno = 2276 (0x8e4), region = 124 }
  0x21   : > { %2918 = sst [smem:[#allocation8_spill]] %s2977_s28 }
  0x25   : > { %p1042_p5 = scmp.lt.s32.totalorder %s2391_s4, 1  ;;  %p1049_p6 = scmp.lt.s32.totalorder %s2387_s7, 1 }
  0x26   : > { %s2921_s28 = sld [smem:[#allocation15_spill]] }
  0x27   : > { %s2979_s4 = smov (!%p1042_p5, %s2391_s4), 1  ;;  %s2922_s25 = sld [smem:[#allocation19_spill]] }
  0x28   : > { %2919 = sst [smem:[#allocation9_spill]] %s2979_s4  ;;  %s2586_s10 = sshll.u32 %s2979_s4, 3 }
  0x29   : > { %s2583_s0 = scalar_select %p1049_p6, %s2387_s7, 1 }
  0x2a   : > { %s2924_s22 = sld [smem:[#allocation20_spill]] }
  0x2b   : > { %s2252_s30 = sshll.u32 %s2583_s0, 5  ;;  %s2926_s6 = sld [smem:[#allocation21_spill]] }
  0x2c   : > { %s1045_s5 = scalar_lea.vmem %s2921_s28, %s2586_s10  ;;  %s2116_s28 = sshll.u32 %s2583_s0, 1 }
  0x2d   : > { %s2600_s23 = scalar_lea.vmem %s2922_s25, %s2252_s30  ;;  %s2928_s8 = sld [smem:[#allocation22_spill]] }
  0x2e   : > { %2923 = sst [smem:[#allocation10_spill]] %s2600_s23  ;;  %s2255_s1 = sshll.u32 %s2583_s0, 4 }
  0x2f   : > { %s2930_s21 = sld [smem:[#allocation23_spill]]  ;;  %s1108_s23 = scalar_lea.vmem %s2867_s18, %s2583_s0 }
  0x30   : > { %s2605_s20 = scalar_lea.vmem %s2924_s22, %s2252_s30  ;;  %s2932_s7 = sld [smem:[#allocation25_spill]] }
  0x31   : > { %2925 = sst [smem:[#allocation11_spill]] %s2605_s20  ;;  %s2610_s2 = scalar_lea.vmem %s2926_s6, %s2252_s30 }
  0x32   : > { %2927 = sst [smem:[#allocation12_spill]] %s2610_s2 }
  0x33   : > { %s2616_s25 = scalar_lea.vmem %s2928_s8, %s2116_s28  ;;  %s2931_s20 = sld [smem:[#allocation24_spill]] }
  0x34   : > { %2929 = sst [smem:[#allocation13_spill]] %s2616_s25  ;;  %s1105_s8 = scalar_lea.vmem %s2866_s17, %s2583_s0 }
  0x35   : > { %s2621_s24 = scalar_lea.vmem %s2930_s21, %s2116_s28  ;;  %s2935_s14 = sld [smem:[#allocation27_spill]] }
  0x36   : > { %s2632_s27 = scalar_lea.vmem %s2932_s7, %s2255_s1  ;;  %s2936_s16 = sld [smem:[#allocation28_spill]] }
  0x37   : > { %2933 = sst [smem:[#allocation14_spill]] %s2632_s27 }
  0x38   : > { %s2938_s7 = sld [smem:[#allocation36_spill]] }
  0x39   : > { %s2626_s29 = scalar_lea.vmem %s2931_s20, %s2116_s28  ;;  %s2937_s28 = sld [smem:[#allocation29_spill]] }
  0x3b   : > { %s2649_s22 = scalar_lea.vmem %s2935_s14, %s2255_s1 }
  0x3c   : > { %s2658_s3 = scalar_lea.vmem %s2936_s16, %s2252_s30  ;;  %s2939_s30 = sld [smem:[#allocation37_spill]] }
  0x3d   : > { %s2940_s16 = sld [smem:[#allocation3_spill]] }
  0x3e   : > { %s1115_s6 = scalar_lea.vmem %s2938_s7, %s2586_s10 }
  0x3f   : > { %s1111_s4 = scalar_lea.vmem %s2937_s28, %s2583_s0 }
  0x42   : > { %s1119_s11 = scalar_lea.vmem %s2939_s30, %s2586_s10 }
  0x43   : > { %p2127_p7 = scmp.ne.s32.totalorder %s2940_s16, 0 }
  0x44   : > { %s2942_s26 = sld [smem:[#allocation18_spill]] (!%p2127_p7) }
  0x45   : > { %1124 = sbr.rel (%p2127_p7) target bundleno = 344 (0x158), region = 128 }
  0x4a   : > { %v1125_v0 = vld [vmem:[%s1045_s5] sm:$0xff]  ;;  %vm1128_vm0 = vcmask 261120   ;;  %v2405_v2 = vmov 32.0   ;;  %s2941_s5 = sld [smem:[#allocation17_spill]] }
  0x4b   : > { %v1129_v1 = vsel %vm1128_vm0, %v1125_v0, 0.0  ;;  %2328 = vrcp.f32 %v2405_v2  ;;  %v2327_v25 = vld [vmem:[%s2942_s26] ss:$0 sm:$0xff] }
  0x4c   : > { %1130 = vadd.xlane.f32.xlu0 %v1129_v1 }
  0x50   : > { %v2326_v23 = vld [vmem:[%s2941_s5] ss:$0 sm:$0xff] }
  0x51   : > { %v2329_v3 = vpop.eup %2328 }
  0x52   : > { %v1133_v4 = vmul.f32 32.0, %v2329_v3  ;;  %vm1137_vm1 = vweird.f32 %v2329_v3 }
  0x54   : > { %v1134_v5 = vsub.f32 1.0, %v1133_v4 }
  0x56   : > { %v1135_v6 = vmul.f32 %v2329_v3, %v1134_v5 }
  0x58   : > { %v1136_v7 = vadd.f32 %v2329_v3, %v1135_v6 }
  0x5a   : > { %v1138_v8 = vsel %vm1137_vm1, %v2329_v3, %v1136_v7 }
  0xbf   : > { %v1131_v9 = vpop.xlane.xlu0 %1130 }
  0xc0   : > { %v1139_v10 = vmul.f32 %v1138_v8, %v1131_v9 }
  0xc2   : > { %v1140_v11 = vsub.f32 %v1125_v0, %v1139_v10 }
  0xc4   : > { %v1141_v12 = vmul.f32 %v1140_v11, %v1140_v11 }
  0xc6   : > { %v1142_v13 = vsel %vm1128_vm0, %v1141_v12, 0.0 }
  0xc7   : > { %1143 = vadd.xlane.f32.xlu0 %v1142_v13 }
 0x13a   : > { %v1144_v14 = vpop.xlane.xlu0 %1143 }
 0x13b   : > { %v1145_v15 = vmul.f32 %v1144_v14, %v1138_v8 }
 0x13d   : > { %v1146_v16 = vadd.f32 1e-05, %v1145_v15 }
 0x13f   : > { %2330 = vrsqrt.f32 %v1146_v16  ;;  %vm1153_vm3 = vweird.f32 %v1146_v16 }
 0x145   : > { %v2331_v17 = vpop.eup %2330 }
 0x146   : > { %v1148_v18 = vmul.f32 %v2331_v17, %v1146_v16  ;;  %vm1154_vm2 = vweird.f32 %v2331_v17 }
 0x147   : > { %vm1155_vm4 = vmor %vm1153_vm3, %vm1154_vm2 }
 0x148   : > { %v1149_v19 = vmul.f32 %v2331_v17, %v1148_v18 }
 0x14a   : > { %v1150_v20 = vmul.f32 0.5, %v1149_v19 }
 0x14c   : > { %v1151_v21 = vsub.f32 1.5, %v1150_v20 }
 0x14e   : > { %v1152_v22 = vmul.f32 %v2331_v17, %v1151_v21 }
 0x150   : > { %v1156_v24 = vsel %vm1155_vm4, %v2331_v17, %v1152_v22 }
 0x151   : > { %v1157_v26 = vmul.f32 %v1156_v24, %v1140_v11 }
 0x153   : > { %v1161_v27 = vmul.f32 %v2326_v23, %v1157_v26 }
 0x155   : > { %v1165_v28 = vadd.f32 %v2327_v25, %v1161_v27 }
 0x157   : > { %1166 = vst.msk [vmem:[#allocation2] sm:$0xff] %vm1128_vm0, %v1165_v28 }
 0x158 PF: > { %s2943_s9 = sld [smem:[#allocation11_spill]]  ;;  %vm1198_vm5 = vcmask 261120   ;;  %v2332_v41 = vld [vmem:[%s2621_s24] ss:$0 sm:$0xff]  ;;  %v2333_v42 = vld [vmem:[%s2621_s24 + $0x1] ss:$0 sm:$0xff]  ;;  %s2953_s19 = scalar_lea.vmem %s2861_s12, %s2583_s0 }
 0x159   : > { %s2944_s21 = sld [smem:[#allocation10_spill]]  ;;  %vm1376_vm6 = vcmask 130048   ;;  %vm1422_vm7 = vcmask 64512   ;;  %v2337_v12 = vld [vmem:[%s2626_s29] ss:$0 sm:$0xff]  ;;  %vm1452_vm8 = vcmask 1043456  }
 0x15a   : > { %s2945_s20 = sld [smem:[#allocation13_spill]]  ;;  %v2338_v13 = vld [vmem:[%s2626_s29 + $0x1] ss:$0 sm:$0xff]  ;;  %vm1669_vm13 = vcmask 523264  }
 0x15b   : > { %s2946_s1 = sld [smem:[#allocation12_spill]] }
 0x15c   : > { %s2947_s24 = sld [smem:[#allocation9_spill]] }
 0x15d   : > { %s2948_s7 = sld [smem:[#allocation16_spill]] }
 0x15e   : > { %v2263_v29 = vld [vmem:[%s2943_s9 + $0x8] sm:$0xff]  ;;  %v2265_v30 = vld [vmem:[%s2943_s9 + $0x18] sm:$0xff]  ;;  %v2262_v31 = vld [vmem:[%s2943_s9] sm:$0xff]  ;;  %s2950_s29 = sld [smem:[#allocation14_spill]] }
 0x15f   : > { %v2264_v32 = vld [vmem:[%s2943_s9 + $0x10] sm:$0xff]  ;;  %v2259_v33 = vld [vmem:[%s2944_s21 + $0x8] sm:$0xff]  ;;  %1274 = vmatpush.bf16.msra.mxu2 %v2263_v29  ;;  %1299 = vmatpush.bf16.msra.mxu3 %v2265_v30  ;;  %v2695_v34 = vld [vmem:[#allocation2] sm:$0xff]  ;;  %s2951_s16 = sld [smem:[#allocation26_spill]] }
 0x160   : > { %v2258_v35 = vld [vmem:[%s2944_s21] sm:$0xff]  ;;  %v2261_v36 = vld [vmem:[%s2944_s21 + $0x18] sm:$0xff]  ;;  %1208 = vmatpush.bf16.msra.mxu0 %v2259_v33  ;;  %v2260_v37 = vld [vmem:[%s2944_s21 + $0x10] sm:$0xff]  ;;  %v1169_v38 = vpack.c.bf16 %v2695_v34, %v2695_v34  ;;  %s2954_s21 = scalar_lea.vmem %s2862_s13, %s2583_s0  ;;  %s2957_s30 = sld [smem:[#allocation3_spill]] }
 0x161   : > { %1233 = vmatpush.bf16.msra.mxu1 %v2261_v36  ;;  %v2334_v47 = vld [vmem:[%s2945_s20] ss:$0 sm:$0xff]  ;;  %v2335_v48 = vld [vmem:[%s2945_s20 + $0x1] ss:$0 sm:$0xff]  ;;  %v2267_v61 = vld [vmem:[%s2946_s1 + $0x8] sm:$0xff] }
 0x162   : > { %v2269_v62 = vld [vmem:[%s2946_s1 + $0x18] sm:$0xff]  ;;  %v2266_v63 = vld [vmem:[%s2946_s1] sm:$0xff]  ;;  %v2268_v0 = vld [vmem:[%s2946_s1 + $0x10] sm:$0xff] }
 0x163   : > { %1275 = vmatpush.bf16.msra.mxu2 %v2262_v31  ;;  %1300 = vmatpush.bf16.msra.mxu3 %v2264_v32  ;;  %s2949_s27 = scalar_lea.vmem %s2948_s7, %s2947_s24  ;;  %s2955_s24 = scalar_lea.vmem %s2864_s15, %s2583_s0 }
 0x164   : > { %1209 = vmatpush.bf16.msra.mxu0 %v2258_v35  ;;  %v2336_v1 = vld [vmem:[%s2949_s27] ss:$0 sm:$0xff] }
 0x165   : > { %1234 = vmatpush.bf16.msra.mxu1 %v2260_v37  ;;  %s2952_s5 = scalar_lea.vmem %s2951_s16, %s2583_s0 }
 0x166   : > { %2154 = vmatmul.msk.bf16.vlgmr.msra.gmra.mxu2 %vm1198_vm5, %v1169_v38  ;;  %2163 = vmatmul.msk.bf16.vlgmr.msra.gmra.mxu3 %vm1198_vm5, %v1169_v38  ;;  %p2222_p8 = scmp.ne.s32.totalorder %s2957_s30, 1 }
 0x167   : > { %2136 = vmatmul.msk.bf16.vlgmr.msra.gmra.mxu0 %vm1198_vm5, %v1169_v38  ;;  %s2960_s9 = sld [smem:[#allocation34_spill]] (!%p2222_p8) }
 0x168   : > { %2145 = vmatmul.msk.bf16.vlgmr.msra.gmra.mxu1 %vm1198_vm5, %v1169_v38  ;;  %1340 = vmatpush.bf16.msrb.mxu0 %v2267_v61  ;;  %s2962_s2 = sld [smem:[#allocation31_spill]] (!%p2222_p8) }
 0x169   : > { %1365 = vmatpush.bf16.msrb.mxu1 %v2269_v62  ;;  %v2406_v62 = vmov 32.0   ;;  %s2965_s0 = sld [smem:[#allocation35_spill]] (!%p2222_p8) }
 0x16c   : > { %1341 = vmatpush.bf16.msrb.mxu0 %v2266_v63 }
 0x16d   : > { %1366 = vmatpush.bf16.msrb.mxu1 %v2268_v0 }
 0x177   : > { %2172 = vmatmul.msk.bf16.vlgmr.msrb.gmra.mxu0 %vm1198_vm5, %v1169_v38 }
 0x178   : > { %2181 = vmatmul.msk.bf16.vlgmr.msrb.gmra.mxu1 %vm1198_vm5, %v1169_v38 }
 0x1e4   : > { %v1211_v39 = vpop.f32.mrf.mxu0 }
 0x1e5   : > { %v1236_v40 = vpop.f32.mrf.mxu1  ;;  %v1212_v54 = vadd.f32 %v2334_v47, %v1211_v39 }
 0x1e6   : > { %v1237_v56 = vadd.f32 %v2335_v48, %v1236_v40 }
 0x1e7   : > { %v1372_v59 = vpack.c.bf16 %v1212_v54, %v1212_v54  ;;  %v2339_v54 = vld [vmem:[%s2952_s5] ss:$0 sm:$0xff]  ;;  %s2958_s5 = sld [smem:[#allocation30_spill]] (!%p2222_p8) }
 0x1e8   : > { %v1373_v60 = vpack.c.bf16 %v1237_v56, %v1237_v56 }
 0x1e9   : > { %v1277_v43 = vpop.f32.mrf.mxu2  ;;  %v1302_v44 = vpop.f32.mrf.mxu3 }
 0x1ea   : > { %v1278_v45 = vadd.f32 %v2332_v41, %v1277_v43  ;;  %v1303_v46 = vadd.f32 %v2333_v42, %v1302_v44  ;;  %v2270_v43 = vld [vmem:[%s2950_s29] sm:$0xff]  ;;  %v2271_v44 = vld [vmem:[%s2950_s29 + $0x8] sm:$0xff]  ;;  %s2963_s29 = sld [smem:[#allocation33_spill]] (!%p2222_p8) }
 0x1ec   : > { %v1374_v49 = vpack.c.bf16 %v1278_v45, %v1278_v45  ;;  %v1375_v50 = vpack.c.bf16 %v1303_v46, %v1303_v46  ;;  %v1213_v51 = vpop.f32.mrf.mxu0 }
 0x1ed   : > { %v1238_v52 = vpop.f32.mrf.mxu1 }
 0x1ee   : > { %v1381_v53 = vsel %vm1376_vm6, %v1374_v49, 0  ;;  %v1400_v55 = vsel %vm1376_vm6, %v1375_v50, 0 }
 0x1ef   : > { %1390 = vmatpush.bf16.xpose.msrb.mxu2 %v1381_v53  ;;  %1409 = vmatpush.bf16.xpose.msrb.mxu3 %v1400_v55 }
 0x1f1   : > { %v1279_v57 = vpop.f32.mrf.mxu2  ;;  %v1304_v58 = vpop.f32.mrf.mxu3 }
 0x1f4   : > { %v1343_v14 = vpop.f32.mrf.mxu0 }
 0x1f5   : > { %v1368_v15 = vpop.f32.mrf.mxu1  ;;  %v1344_v16 = vadd.f32 %v2337_v12, %v1343_v14 }
 0x1f6   : > { %2182 = vmatmul.msk.bf16.vlgmr.msrb.gmra.mxu2 %vm1376_vm6, %v1372_v59  ;;  %2183 = vmatmul.msk.bf16.vlgmr.msrb.gmra.mxu3 %vm1376_vm6, %v1373_v60  ;;  %v1369_v17 = vadd.f32 %v2338_v13, %v1368_v15 }
 0x1f7   : > { %v1447_v18 = vpack.c.bf16 %v1344_v16, %v1344_v16  ;;  %1510 = vmatpush.bf16.msra.mxu2 %v2270_v43  ;;  %1532 = vmatpush.bf16.msra.mxu3 %v2271_v44 }
 0x1f8   : > { %v1448_v19 = vpack.c.bf16 %v1369_v17, %v1369_v17 }
 0x1f9   : > { %v1454_v21 = vsel %vm1452_vm8, %v1447_v18, 0 }
 0x1fa   : > { %v1473_v22 = vsel %vm1452_vm8, %v1448_v19, 0  ;;  %1463 = vmatpush.bf16.msra.mxu0 %v1454_v21 }
 0x1fb   : > { %1482 = vmatpush.bf16.msra.mxu1 %v1473_v22  ;;  %v2341_v22 = vld [vmem:[%s2954_s21] ss:$0 sm:$0xff]  ;;  %s2961_s21 = smov (!%p2222_p8), %s2960_s9 }
 0x1fc   : > { %v1345_v25 = vpop.f32.mrf.mxu0 }
 0x1fd   : > { %v1370_v26 = vpop.f32.mrf.mxu1 }
 0x279   : > { %v1392_v2 = vpop.f32.mrf.mxu2  ;;  %v1411_v3 = vpop.f32.mrf.mxu3 }
 0x27a   : > { %v1415_v4 = vmul.f32 0.25, %v1392_v2  ;;  %v1416_v6 = vmul.f32 0.25, %v1411_v3 }
 0x27c   : > { %v1420_v5 = vadd.f32 %v2336_v1, %v1415_v4  ;;  %v1421_v8 = vadd.f32 %v2336_v1, %v1416_v6 }
 0x27e   : > { %v1423_v7 = vsel %vm1422_vm7, %v1420_v5, -inf  ;;  %v1426_v11 = vsel %vm1422_vm7, %v1421_v8, -inf }
 0x27f   : > { %1424 = vmax.xlane.f32.xlu0 %v1423_v7 }
 0x281   : > { %v1394_v9 = vpop.f32.mrf.mxu2  ;;  %v1413_v10 = vpop.f32.mrf.mxu3 }
 0x282   : > { %v2273_v9 = vld [vmem:[%s2649_s22 + $0x8] sm:$0xff]  ;;  %v2272_v10 = vld [vmem:[%s2649_s22] sm:$0xff]  ;;  %s2959_s22 = sld [smem:[#allocation32_spill]] (!%p2222_p8) }
 0x283   : > { %1616 = vmatpush.bf16.msrb.mxu0 %v2273_v9 }
 0x287   : > { %1427 = vmax.xlane.f32.xlu0 %v1426_v11  ;;  %1617 = vmatpush.bf16.msrb.mxu0 %v2272_v10 }
 0x2f2   : > { %v1425_v20 = vpop.xlane.xlu0 %1424 }
 0x2f3   : > { %v1429_v23 = vsub.f32 %v1420_v5, %v1425_v20  ;;  %v2340_v20 = vld [vmem:[%s2953_s19] ss:$0 sm:$0xff] }
 0x2f5   : > { %v1431_v24 = vmul.f32 1.442695, %v1429_v23 }
 0x2f7   : > { %2346 = vpow2.f32 %v1431_v24 }
 0x2fa   : > { %v1428_v27 = vpop.xlane.xlu0 %1427 }
 0x2fb   : > { %v1430_v28 = vsub.f32 %v1421_v8, %v1428_v27  ;;  %v2277_v27 = vld [vmem:[%s2658_s3 + $0x18] sm:$0xff] }
 0x2fc   : > { %1677 = vmatpush.bf16.msrb.mxu1 %v2277_v27 }
 0x2fd   : > { %v2347_v29 = vpop.eup %2346  ;;  %v1433_v30 = vmul.f32 1.442695, %v1430_v28  ;;  %v2276_v28 = vld [vmem:[%s2658_s3 + $0x10] sm:$0xff] }
 0x2fe   : > { %v1435_v31 = vsel %vm1422_vm7, %v2347_v29, 0.0 }
 0x2ff   : > { %2348 = vpow2.f32 %v1433_v30  ;;  %1436 = vadd.xlane.f32.xlu1 %v1435_v31  ;;  %v2274_v30 = vld [vmem:[%s2658_s3] sm:$0xff] }
 0x300   : > { %1678 = vmatpush.bf16.msrb.mxu1 %v2276_v28  ;;  %v2342_v31 = vld [vmem:[%s2955_s24] ss:$0 sm:$0xff] }
 0x305   : > { %v2349_v32 = vpop.eup %2348 }
 0x306   : > { %v1438_v33 = vsel %vm1422_vm7, %v2349_v32, 0.0 }
 0x307   : > { %1439 = vadd.xlane.f32.xlu1 %v1438_v33 }
 0x372   : > { %v1437_v35 = vpop.xlane.xlu1 %1436 }
 0x373   : > { %2350 = vrcp.f32 %v1437_v35 }
 0x379   : > { %v2351_v36 = vpop.eup %2350 }
 0x37a   : > { %v1443_v37 = vmul.f32 %v2351_v36, %v2347_v29  ;;  %v1440_v38 = vpop.xlane.xlu1 %1439  ;;  %v2275_v29 = vld [vmem:[%s2658_s3 + $0x8] sm:$0xff] }
 0x37b   : > { %2352 = vrcp.f32 %v1440_v38  ;;  %1679 = vmatpush.bf16.msrb.mxu1 %v2275_v29 }
 0x37c   : > { %v1445_v39 = vpack.c.bf16 %v1443_v37, %v1443_v37  ;;  %2354 = vrcp.f32 %v2406_v62 }
 0x37e   : > { %2184 = vmatmul.msk.bf16.vlgmr.msra.gmra.mxu0 %vm1422_vm7, %v1445_v39 }
 0x37f   : > { %1680 = vmatpush.bf16.msrb.mxu1 %v2274_v30 }
 0x381   : > { %v2353_v40 = vpop.eup %2352 }
 0x382   : > { %v1444_v41 = vmul.f32 %v2353_v40, %v2349_v32  ;;  %v2355_v63 = vpop.eup %2354 }
 0x383   : > { %v1553_v0 = vmul.f32 32.0, %v2355_v63  ;;  %vm1557_vm9 = vweird.f32 %v2355_v63 }
 0x384   : > { %v1446_v42 = vpack.c.bf16 %v1444_v41, %v1444_v41 }
 0x385   : > { %v1554_v1 = vsub.f32 1.0, %v1553_v0 }
 0x386   : > { %2185 = vmatmul.msk.bf16.vlgmr.msra.gmra.mxu1 %vm1422_vm7, %v1446_v42 }
 0x387   : > { %v1555_v2 = vmul.f32 %v2355_v63, %v1554_v1 }
 0x389   : > { %v1556_v3 = vadd.f32 %v2355_v63, %v1555_v2  ;;  %v2344_v2 = vld [vmem:[%s1108_s23] ss:$0 sm:$0xff] }
 0x38b   : > { %v2746_v4 = vsel %vm1557_vm9, %v2355_v63, %v1556_v3 }
 0x3fb   : > { %v1465_v45 = vpop.f32.mrf.mxu0 }
 0x3fc   : > { %v1488_v46 = vpack.c.bf16 %v1465_v45, %v1465_v45 }
 0x3fe   : > { %2190 = vmatmul.msk.bf16.vlgmr.msra.gmra.mxu2 %vm1376_vm6, %v1488_v46  ;;  %v2343_v46 = vld [vmem:[%s1105_s8] ss:$0 sm:$0xff] }
 0x403   : > { %v1467_v47 = vpop.f32.mrf.mxu0  ;;  %v1484_v48 = vpop.f32.mrf.mxu1 }
 0x404   : > { %v1489_v49 = vpack.c.bf16 %v1484_v48, %v1484_v48 }
 0x406   : > { %2195 = vmatmul.msk.bf16.vlgmr.msra.gmra.mxu3 %vm1376_vm6, %v1489_v49 }
 0x40b   : > { %v1486_v50 = vpop.f32.mrf.mxu1 }
 0x481   : > { %v1512_v51 = vpop.f32.mrf.mxu2 }
 0x482   : > { %v1538_v55 = vsel %vm1198_vm5, %v1512_v51, 0.0 }
 0x489   : > { %v1514_v52 = vpop.f32.mrf.mxu2  ;;  %v1534_v53 = vpop.f32.mrf.mxu3 }
 0x48a   : > { %v1539_v56 = vsel %vm1198_vm5, %v1534_v53, 0.0 }
 0x48b   : > { %v1540_v57 = vadd.f32 %v1539_v56, %v1538_v55 }
 0x48d   : > { %v1545_v58 = vadd.f32 %v2339_v54, %v1540_v57 }
 0x48f   : > { %v1546_v59 = vadd.f32 %v1545_v58, %v2695_v34 }
 0x491   : > { %v1536_v60 = vpop.f32.mrf.mxu3  ;;  %v1549_v61 = vsel %vm1198_vm5, %v1546_v59, 0.0 }
 0x492   : > { %1550 = vadd.xlane.f32.xlu2 %v1549_v61 }
 0x505   : > { %v1551_v5 = vpop.xlane.xlu2 %1550 }
 0x506   : > { %v1559_v6 = vmul.f32 %v2746_v4, %v1551_v5 }
 0x508   : > { %v1560_v34 = vsub.f32 %v1546_v59, %v1559_v6 }
 0x50a   : > { %v1561_v7 = vmul.f32 %v1560_v34, %v1560_v34 }
 0x50c   : > { %v1562_v8 = vsel %vm1198_vm5, %v1561_v7, 0.0 }
 0x50d   : > { %1563 = vadd.xlane.f32.xlu2 %v1562_v8 }
 0x580   : > { %v1564_v11 = vpop.xlane.xlu2 %1563 }
 0x581   : > { %v1565_v12 = vmul.f32 %v1564_v11, %v2746_v4 }
 0x583   : > { %v1566_v13 = vadd.f32 1e-05, %v1565_v12 }
 0x585   : > { %2356 = vrsqrt.f32 %v1566_v13  ;;  %vm1573_vm11 = vweird.f32 %v1566_v13 }
 0x58b   : > { %v2357_v14 = vpop.eup %2356 }
 0x58c   : > { %v1568_v15 = vmul.f32 %v2357_v14, %v1566_v13  ;;  %vm1574_vm10 = vweird.f32 %v2357_v14 }
 0x58d   : > { %vm1575_vm12 = vmor %vm1573_vm11, %vm1574_vm10 }
 0x58e   : > { %v1569_v16 = vmul.f32 %v2357_v14, %v1568_v15 }
 0x590   : > { %v1570_v17 = vmul.f32 0.5, %v1569_v16 }
 0x592   : > { %v1571_v18 = vsub.f32 1.5, %v1570_v17 }
 0x594   : > { %v1572_v19 = vmul.f32 %v2357_v14, %v1571_v18 }
 0x596   : > { %v1576_v21 = vsel %vm1575_vm12, %v2357_v14, %v1572_v19 }
 0x597   : > { %v1577_v23 = vmul.f32 %v1576_v21, %v1560_v34 }
 0x599   : > { %v1581_v24 = vmul.f32 %v2340_v20, %v1577_v23 }
 0x59b   : > { %v1585_v25 = vadd.f32 %v2341_v22, %v1581_v24 }
 0x59d   : > { %v1586_v26 = vpack.c.bf16 %v1585_v25, %v1585_v25 }
 0x59f   : > { %2204 = vmatmul.msk.bf16.vlgmr.msrb.gmra.mxu0 %vm1198_vm5, %v1586_v26 }
 0x61c   : > { %v1619_v32 = vpop.f32.mrf.mxu0 }
 0x61d   : > { %v1620_v33 = vadd.f32 %v2342_v31, %v1619_v32 }
 0x61f   : > { %v1623_v35 = vmul.f32 %v1620_v33, %v1620_v33 }
 0x621   : > { %v1624_v36 = vmul.f32 %v1623_v35, %v1620_v33 }
 0x623   : > { %v1625_v37 = vmul.f32 0.044715, %v1624_v36 }
 0x624   : > { %v1621_v38 = vpop.f32.mrf.mxu0 }
 0x625   : > { %v1626_v39 = vadd.f32 %v1625_v37, %v1620_v33 }
 0x627   : > { %v1627_v40 = vmul.f32 0.7978846, %v1626_v39 }
 0x629   : > { %2358 = vtanh.f32 %v1627_v40 }
 0x62f   : > { %v2359_v41 = vpop.eup %2358 }
 0x630   : > { %v1629_v42 = vadd.f32 1.0, %v2359_v41 }
 0x632   : > { %v1630_v43 = vmul.f32 0.5, %v1629_v42 }
 0x634   : > { %v1631_v44 = vmul.f32 %v1630_v43, %v1620_v33 }
 0x636   : > { %v1632_v45 = vpack.c.bf16 %v1631_v44, %v1631_v44 }
 0x638   : > { %2221 = vmatmul.msk.bf16.vlgmr.msrb.gmra.mxu1 %vm1669_vm13, %v1632_v45 }
 0x6b5   : > { %v1682_v47 = vpop.f32.mrf.mxu1 }
 0x6b6   : > { %v1683_v48 = vadd.f32 %v2343_v46, %v1682_v47 }
 0x6b8   : > { %v1686_v49 = vadd.f32 %v1683_v48, %v1585_v25 }
 0x6ba   : > { %v1689_v50 = vsel %vm1198_vm5, %v1686_v49, 0.0 }
 0x6bb   : > { %1690 = vadd.xlane.f32.xlu0 %v1689_v50 }
 0x6bd   : > { %v1684_v51 = vpop.f32.mrf.mxu1 }
 0x72e   : > { %v1691_v52 = vpop.xlane.xlu0 %1690 }
 0x72f   : > { %v1692_v53 = vmul.f32 %v1691_v52, %v2746_v4 }
 0x731   : > { %v1693_v54 = vsub.f32 %v1686_v49, %v1692_v53 }
 0x733   : > { %v1694_v55 = vmul.f32 %v1693_v54, %v1693_v54 }
 0x735   : > { %v1695_v56 = vsel %vm1198_vm5, %v1694_v55, 0.0 }
 0x736   : > { %1696 = vadd.xlane.f32.xlu1 %v1695_v56 }
 0x7a9   : > { %v1697_v57 = vpop.xlane.xlu1 %1696 }
 0x7aa   : > { %v1698_v58 = vmul.f32 %v1697_v57, %v2746_v4  ;;  %v2345_v4 = vld [vmem:[%s1111_s4] ss:$0 sm:$0xff] }
 0x7ac   : > { %v1699_v59 = vadd.f32 1e-05, %v1698_v58 }
 0x7ae   : > { %2360 = vrsqrt.f32 %v1699_v59  ;;  %vm1706_vm15 = vweird.f32 %v1699_v59 }
 0x7b4   : > { %v2361_v60 = vpop.eup %2360 }
 0x7b5   : > { %v1701_v61 = vmul.f32 %v2361_v60, %v1699_v59  ;;  %vm1707_vm14 = vweird.f32 %v2361_v60 }
 0x7b6   : > { %vm1708_vm0 = vmor %vm1706_vm15, %vm1707_vm14 }
 0x7b7   : > { %v1702_v62 = vmul.f32 %v2361_v60, %v1701_v61 }
 0x7b9   : > { %v1703_v63 = vmul.f32 0.5, %v1702_v62 }
 0x7bb   : > { %v1704_v0 = vsub.f32 1.5, %v1703_v63 }
 0x7bd   : > { %v1705_v1 = vmul.f32 %v2361_v60, %v1704_v0 }
 0x7bf   : > { %v1709_v3 = vsel %vm1708_vm0, %v2361_v60, %v1705_v1 }
 0x7c0   : > { %v1710_v5 = vmul.f32 %v1709_v3, %v1693_v54 }
 0x7c2   : > { %v1714_v6 = vmul.f32 %v2344_v2, %v1710_v5  ;;  %1723 = sbr.rel (%p2222_p8) target bundleno = 2276 (0x8e4), region = 132 }
 0x7c4   : > { %v1718_v34 = vadd.f32 %v2345_v4, %v1714_v6 }
 0x7c6   : > { %1719 = vst.msk [vmem:[#allocation2] sm:$0xff] %vm1198_vm5, %v1718_v34 }
 0x7c7   : > { %v2281_v7 = vld [vmem:[%s2958_s5 + $0x8] sm:$0xff]  ;;  %v2280_v8 = vld [vmem:[%s2958_s5] sm:$0xff]  ;;  %v1724_v9 = vpack.c.bf16 %v1718_v34, %v1718_v34 }
 0x7c8   : > { %1785 = vmatpush.bf16.msra.mxu1 %v2281_v7  ;;  %v2279_v10 = vld [vmem:[%s2959_s22 + $0x8] sm:$0xff]  ;;  %v2278_v12 = vld [vmem:[%s2959_s22] sm:$0xff] }
 0x7c9   : > { %1754 = vmatpush.bf16.msra.mxu0 %v2279_v10  ;;  %v2283_v11 = vld [vmem:[%s2960_s9 + $0x8] sm:$0xff]  ;;  %v2282_v13 = vld [vmem:[%s2961_s21] sm:$0xff] }
 0x7ca   : > { %1820 = vmatpush.bf16.msra.mxu2 %v2283_v11  ;;  %v1766_v14 = vld [vmem:[%s2962_s2] sm:$0x1] }
 0x7cb   : > { %v2362_v20 = vld [vmem:[%s2963_s29] ss:$0 sm:$0xff] }
 0x7cc   : > { %1786 = vmatpush.bf16.msra.mxu1 %v2280_v8  ;;  %v1798_v24 = vld [vmem:[%s2965_s0] sm:$0x1] }
 0x7cd   : > { %1755 = vmatpush.bf16.msra.mxu0 %v2278_v12 }
 0x7ce   : > { %1821 = vmatpush.bf16.msra.mxu2 %v2282_v13 }
 0x7cf   : > { %2240 = vmatmul.msk.bf16.vlgmr.msra.gmra.mxu1 %vm1198_vm5, %v1724_v9 }
 0x7d0   : > { %2231 = vmatmul.msk.bf16.vlgmr.msra.gmra.mxu0 %vm1198_vm5, %v1724_v9 }
 0x84c   : > { %v1788_v15 = vpop.f32.mrf.mxu1 }
 0x84d   : > { %v1789_v16 = vadd.f32 %v1788_v15, %v1766_v14  ;;  %v1757_v21 = vpop.f32.mrf.mxu0 }
 0x84e   : > { %v1758_v22 = vadd.f32 %v2362_v20, %v1757_v21 }
 0x84f   : > { %2363 = vtanh.f32 %v1789_v16 }
 0x850   : > { %1761 = vst [vmem:[%s1115_s6] sm:$0xff] %v1758_v22 }
 0x854   : > { %v1790_v17 = vpop.f32.mrf.mxu1 }
 0x855   : > { %v2364_v18 = vpop.eup %2363  ;;  %v1759_v23 = vpop.f32.mrf.mxu0 }
 0x856   : > { %v1793_v19 = vpack.c.bf16 %v2364_v18, %v2364_v18 }
 0x858   : > { %2249 = vmatmul.msk.bf16.vlgmr.msra.gmra.mxu2 %vm1198_vm5, %v1793_v19 }
 0x8db   : > { %v1823_v25 = vpop.f32.mrf.mxu2 }
 0x8dc   : > { %v1824_v26 = vadd.f32 %v1823_v25, %v1798_v24 }
 0x8de   : > { %v1827_v27 = vperm.slane %v1824_v26, 0 }
 0x8e0   : > { %1828 = vst [vmem:[%s1119_s11] sm:$0xff] %v1827_v27 }
 0x8e3   : > { %v1825_v28 = vpop.f32.mrf.mxu2 }
 0x8e4 PF: > { %s2967_s9 = sld [smem:[#allocation6_spill]] }
 0x8e5   : > { %s2968_s7 = sld [smem:[#allocation4_spill]] }
 0x8e6   : > { %s2969_s4 = sld [smem:[#allocation5_spill]] }
 0x8e7   : > { %s2970_s8 = sld [smem:[#allocation7_spill]] }
 0x8e8   : > { %s2971_s30 = sld [smem:[#allocation8_spill]] }
 0x8ea   : > { %s38_s9 = sadd.s32 1, %s2967_s9  }
 0x8eb   : > { %p35_p9 = scmp.ge.s32.totalorder %s38_s9, 6  }
 0x8ed   :  { %37 = sbr.rel (!%p35_p9) target bundleno = 24 (0x18), region = 225 }

</bundles_post_ra>
